<compile_context>
chip_gen: v7x
topology: tpu7x:2x2x1
jax: 0.10.0
libtpu: 0.0.40
codegen_flags: <defaults>
</compile_context>

<pallas_src>
import functools
import math

import jax
import jax.numpy as jnp
from jax import lax
from jax.experimental import pallas as pl
from jax.experimental.pallas import tpu as pltpu


# ---------------------------------------------------------------------------
# Fused kernel: folded projections + neighbourhood softmax + out-proj + LN
# ---------------------------------------------------------------------------
def upformer_kernel(x_ref, wk_ref, wv_ref, bk_ref, bv_ref, cst_ref,
                    gam_ref, bet_ref, mred_ref, out_ref,
                    ks_scr, vt_scr, *, H, W, P, ksz, SO):
    HW = H * W

    # Zero the halo scratch: the border ring staying zero reproduces exactly
    # the zero padding of unfold(to_k(x)) / unfold(to_v(x)).
    ks_scr[...] = jnp.zeros_like(ks_scr)
    vt_scr[...] = jnp.zeros_like(vt_scr)

    # ---- Stage 1: folded 1x1 projections for the whole image (two MXU matmuls)
    x2 = x_ref[0]                                               # (HW, C)
    ks_full = (jnp.dot(x2, wk_ref[...], preferred_element_type=jnp.float32)
               + bk_ref[...])                                   # (HW, SO)
    vt_full = (jnp.dot(x2, wv_ref[...], preferred_element_type=jnp.float32)
               + bv_ref[...])                                   # (HW, SO)

    # Scatter image rows into the halo-extended scratch (interior only).
    for h in range(H):
        ks_scr[h + P, P:P + W, :] = ks_full[h * W:(h + 1) * W, :]
        vt_scr[h + P, P:P + W, :] = vt_full[h * W:(h + 1) * W, :]

    shifts = [(di, dj) for di in range(ksz) for dj in range(ksz)]

    # ---- Stage 2: whole-image softmax over the ksz*ksz neighbourhood and the
    # attention-weighted value sum, in lane-dense (H, W, S2*O) layout.
    # pass 1: running max over the neighbourhood (stable softmax)
    d0, j0 = shifts[0]
    m = ks_scr[d0:d0 + H, j0:j0 + W, :]
    for (di, dj) in shifts[1:]:
        m = jnp.maximum(m, ks_scr[di:di + H, dj:dj + W, :])

    # pass 2: exp, denominator, weighted value accumulation
    denom = jnp.zeros((H, W, SO), jnp.float32)
    acc = jnp.zeros((H, W, SO), jnp.float32)
    for (di, dj) in shifts:
        p = jnp.exp(ks_scr[di:di + H, dj:dj + W, :] - m)
        denom = denom + p
        acc = acc + p * vt_scr[di:di + H, dj:dj + W, :]

    out_pre = (acc * pl.reciprocal(denom, approx=True)
               + cst_ref[...]).reshape(HW, SO)                  # (HW, SO)

    # LayerNorm over each out_dim group of the lane-dense layout via a
    # block-diagonal averaging matmul (reduction stays on the MXU).
    mred = mred_ref[...]                                        # (SO, SO)
    mu = jnp.dot(out_pre, mred, preferred_element_type=jnp.float32)
    cent = out_pre - mu
    var = jnp.dot(cent * cent, mred, preferred_element_type=jnp.float32)
    out_ref[0] = cent * lax.rsqrt(var + 1e-5) * gam_ref[...] + bet_ref[...]


# ---------------------------------------------------------------------------
# Wrapper: param folding (host, tiny) + single pallas_call + final reshuffle
# ---------------------------------------------------------------------------
def upformer_pallas(x_nchw, params, *, scale=2, kernel_size=3, heads=1):
    B, C, H, W = x_nchw.shape
    O = params["wo"].shape[1]
    S2 = scale * scale
    SO = S2 * O
    P = (kernel_size - 1) // 2
    Hp, Wp = H + 2 * P, W + 2 * P
    HW = H * W
    scale_f = 1.0 / math.sqrt(C // heads)

    # NCHW -> flat NHWC pixels (host-side layout plumbing, fused by XLA)
    x_flat = jnp.transpose(x_nchw, (0, 2, 3, 1)).reshape(B, HW, C).astype(jnp.float32)

    # ---- fold parameters (param-only matmuls, negligible cost) -------------
    q = params["up_query"] @ params["wq"] + params["bq"]               # (S2, C)
    wscore = (params["wka"] @ q.T) * scale_f                           # (C, S2)
    wk_fold = params["wk"] @ wscore                                    # (C, S2)
    bk_fold = params["bk"] @ wscore                                    # (S2,)
    wvo = params["wva"] @ params["wo"]                                 # (C, O)
    wv_fold = params["wv"] @ wvo                                       # (C, O)
    bv_fold = params["bv"] @ wvo                                       # (O,)
    const_out = params["bva"] @ params["wo"] + params["bo"]            # (O,)
    # (bk-aux and bka score constants are j-independent -> cancel in softmax)

    # broadcast to the lane-dense (S2*O) layout: lane index = s*O + o
    wk_rep = jnp.repeat(wk_fold, O, axis=1)                            # (C, SO)
    bk_rep = jnp.repeat(bk_fold, O).reshape(1, SO)
    wv_rep = jnp.tile(wv_fold, (1, S2))                                # (C, SO)
    bv_rep = jnp.tile(bv_fold, S2).reshape(1, SO)
    const_rep = jnp.tile(const_out, S2).reshape(1, SO)
    gamma_rep = jnp.tile(params["gamma"], S2).reshape(1, SO)
    beta_rep = jnp.tile(params["beta"], S2).reshape(1, SO)
    mred = jnp.kron(jnp.eye(S2, dtype=jnp.float32),
                    jnp.full((O, O), 1.0 / O, jnp.float32))            # (SO, SO)

    kern = functools.partial(upformer_kernel, H=H, W=W, P=P,
                             ksz=kernel_size, SO=SO)
    full2 = lambda b: (0, 0)

    out = pl.pallas_call(
        kern,
        out_shape=jax.ShapeDtypeStruct((B, HW, SO), jnp.float32),
        grid_spec=pltpu.PrefetchScalarGridSpec(
            num_scalar_prefetch=0,
            grid=(B,),
            in_specs=[pl.BlockSpec((1, HW, C), lambda b: (b, 0, 0)),
                      pl.BlockSpec((C, SO), full2),     # wk_rep
                      pl.BlockSpec((C, SO), full2),     # wv_rep
                      pl.BlockSpec((1, SO), full2),     # bk_rep
                      pl.BlockSpec((1, SO), full2),     # bv_rep
                      pl.BlockSpec((1, SO), full2),     # const_rep
                      pl.BlockSpec((1, SO), full2),     # gamma
                      pl.BlockSpec((1, SO), full2),     # beta
                      pl.BlockSpec((SO, SO), full2)],   # group-mean matrix
            out_specs=pl.BlockSpec((1, HW, SO), lambda b: (b, 0, 0)),
            scratch_shapes=[pltpu.VMEM((Hp, Wp, SO), jnp.float32),
                            pltpu.VMEM((Hp, Wp, SO), jnp.float32)]),
        compiler_params=pltpu.CompilerParams(
            dimension_semantics=("parallel",),
            vmem_limit_bytes=64 * 1024 * 1024),
    )(x_flat, wk_rep, wv_rep, bk_rep, bv_rep, const_rep,
      gamma_rep, beta_rep, mred)

    # pixel-shuffle style rearrangement (matches the PyTorch permute)
    out = out.reshape(B, H, W, scale, scale, O)
    out = jnp.transpose(out, (0, 5, 1, 3, 2, 4)).reshape(B, O, H * scale, W * scale)
    return out


# ---------------------------------------------------------------------------
# Pure-JAX reference (mirrors the PyTorch forward op-by-op)
# ---------------------------------------------------------------------------
def unfold_nhwc(y_flat, B, H, W, ks, pad):
    C = y_flat.shape[-1]
    yi = y_flat.reshape(B, H, W, C)
    yp = jnp.pad(yi, ((0, 0), (pad, pad), (pad, pad), (0, 0)))
    pats = [yp[:, di:di + H, dj:dj + W, :] for di in range(ks) for dj in range(ks)]
    return jnp.stack(pats, axis=3).reshape(B * H * W, ks * ks, C)


def upformer_ref(x_nchw, params, *, scale=2, kernel_size=3, heads=1):
    B, C, H, W = x_nchw.shape
    O = params["wo"].shape[1]
    P = (kernel_size - 1) // 2
    N = B * H * W
    xf = jnp.transpose(x_nchw, (0, 2, 3, 1)).reshape(N, C)
    kpix = xf @ params["wk"] + params["bk"]
    vpix = xf @ params["wv"] + params["bv"]
    xk = unfold_nhwc(kpix, B, H, W, kernel_size, P) + params["bk"]     # aux-zeros bias
    xv = unfold_nhwc(vpix, B, H, W, kernel_size, P)
    q = params["up_query"] @ params["wq"] + params["bq"]               # (S2, C)
    kk = xk @ params["wka"] + params["bka"]
    vv = xv @ params["wva"] + params["bva"]
    scores = jnp.einsum("sc,nkc->nsk", q, kk) / math.sqrt(C // heads)
    attn = jax.nn.softmax(scores, axis=-1)
    ctx = jnp.einsum("nsk,nkc->nsc", attn, vv)
    out = ctx @ params["wo"] + params["bo"]
    mu = out.mean(-1, keepdims=True)
    var = ((out - mu) ** 2).mean(-1, keepdims=True)
    out = (out - mu) / jnp.sqrt(var + 1e-5) * params["gamma"] + params["beta"]
    out = out.reshape(B, H, W, scale, scale, O)
    return jnp.transpose(out, (0, 5, 1, 3, 2, 4)).reshape(B, O, H * scale, W * scale)


# ---------------------------------------------------------------------------
# Main
# ---------------------------------------------------------------------------
if __name__ == "__main__":
    B, C, H, W = 2, 32, 8, 8          # small shapes; in_dim=32
    O = 32                            # out_dim -> S2*O = 128 (fully lane-dense)
    SCALE, KS, HEADS = 2, 3, 1
    S2 = SCALE * SCALE

    key = jax.random.PRNGKey(0)
    ks = jax.random.split(key, 16)
    init = lambda k, shape, s=0.1: jax.random.normal(k, shape, jnp.float32) * s

    params = dict(
        wk=init(ks[0], (C, C)), bk=init(ks[1], (C,)),
        wv=init(ks[2], (C, C)), bv=init(ks[3], (C,)),
        up_query=jax.random.normal(ks[4], (S2, C), jnp.float32),
        wq=init(ks[5], (C, C)), bq=init(ks[6], (C,)),
        wka=init(ks[7], (C, C)), bka=init(ks[8], (C,)),
        wva=init(ks[9], (C, C)), bva=init(ks[10], (C,)),
        wo=init(ks[11], (C, O)), bo=init(ks[12], (O,)),
        gamma=jnp.ones((O,), jnp.float32), beta=jnp.zeros((O,), jnp.float32),
    )

    x = jax.random.uniform(ks[13], (B, C, H, W), jnp.float32)   # NCHW like PyTorch

    out = upformer_pallas(x, params, scale=SCALE, kernel_size=KS, heads=HEADS)
    out = jax.block_until_ready(out)

    ref = upformer_ref(x, params, scale=SCALE, kernel_size=KS, heads=HEADS)
    assert out.shape == (B, O, H * SCALE, W * SCALE)
    max_err = float(jnp.max(jnp.abs(out - ref)))
    assert max_err < 1e-2, f"mismatch vs reference: {max_err}"

    print("KERNEL_OK")
</pallas_src>

<mosaic_0001>
module attributes {stable_mosaic.version = 11 : i64} {
  func.func @upformer_kernel(%arg0: i32, %arg1: memref<1x64x32xf32, #tpu.memory_space<vmem>>, %arg2: memref<32x128xf32, #tpu.memory_space<vmem>>, %arg3: memref<32x128xf32, #tpu.memory_space<vmem>>, %arg4: memref<1x128xf32, #tpu.memory_space<vmem>>, %arg5: memref<1x128xf32, #tpu.memory_space<vmem>>, %arg6: memref<1x128xf32, #tpu.memory_space<vmem>>, %arg7: memref<1x128xf32, #tpu.memory_space<vmem>>, %arg8: memref<1x128xf32, #tpu.memory_space<vmem>>, %arg9: memref<128x128xf32, #tpu.memory_space<vmem>>, %arg10: memref<1x64x128xf32, #tpu.memory_space<vmem>>, %arg11: memref<10x10x128xf32, #tpu.memory_space<vmem>>, %arg12: memref<10x10x128xf32, #tpu.memory_space<vmem>>) attributes {dimension_semantics = [#tpu.dimension_semantics<parallel>], iteration_bounds = array<i64: 2>, scalar_prefetch = 0 : i64, scratch_operands = 2 : i64, tpu.core_type = #tpu.core_type<tc>, window_params = [{transform_indices = @transform_0, window_bounds = array<i64: 1, 64, 32>}, {pipeline_mode = #tpu.pipeline_mode<synchronous>, transform_indices = @transform_1, window_bounds = array<i64: 32, 128>}, {pipeline_mode = #tpu.pipeline_mode<synchronous>, transform_indices = @transform_2, window_bounds = array<i64: 32, 128>}, {pipeline_mode = #tpu.pipeline_mode<synchronous>, transform_indices = @transform_3, window_bounds = array<i64: 1, 128>}, {pipeline_mode = #tpu.pipeline_mode<synchronous>, transform_indices = @transform_4, window_bounds = array<i64: 1, 128>}, {pipeline_mode = #tpu.pipeline_mode<synchronous>, transform_indices = @transform_5, window_bounds = array<i64: 1, 128>}, {pipeline_mode = #tpu.pipeline_mode<synchronous>, transform_indices = @transform_6, window_bounds = array<i64: 1, 128>}, {pipeline_mode = #tpu.pipeline_mode<synchronous>, transform_indices = @transform_7, window_bounds = array<i64: 1, 128>}, {pipeline_mode = #tpu.pipeline_mode<synchronous>, transform_indices = @transform_8, window_bounds = array<i64: 128, 128>}, {transform_indices = @transform_9, window_bounds = array<i64: 1, 64, 128>}]} {
    %cst = arith.constant 0.000000e+00 : f32
    %0 = vector.broadcast %cst : f32 to vector<10x10x128xf32>
    %c0 = arith.constant 0 : index
    %c0_0 = arith.constant 0 : index
    %c0_1 = arith.constant 0 : index
    %1 = vector.load %arg11[%c0, %c0_0, %c0_1] : memref<10x10x128xf32, #tpu.memory_space<vmem>>, vector<10x10x128xf32>
    tpu.vector_store %arg11[%c0, %c0_0, %c0_1], %0 {strides = array<i32>} : memref<10x10x128xf32, #tpu.memory_space<vmem>>, vector<10x10x128xf32>,
    %cst_2 = arith.constant 0.000000e+00 : f32
    %2 = vector.broadcast %cst_2 : f32 to vector<10x10x128xf32>
    %c0_3 = arith.constant 0 : index
    %c0_4 = arith.constant 0 : index
    %c0_5 = arith.constant 0 : index
    %3 = vector.load %arg12[%c0_3, %c0_4, %c0_5] : memref<10x10x128xf32, #tpu.memory_space<vmem>>, vector<10x10x128xf32>
    tpu.vector_store %arg12[%c0_3, %c0_4, %c0_5], %2 {strides = array<i32>} : memref<10x10x128xf32, #tpu.memory_space<vmem>>, vector<10x10x128xf32>,
    %c0_6 = arith.constant 0 : index
    %c0_7 = arith.constant 0 : index
    %c0_8 = arith.constant 0 : index
    %4 = vector.load %arg1[%c0_6, %c0_7, %c0_8] : memref<1x64x32xf32, #tpu.memory_space<vmem>>, vector<1x64x32xf32>
    %5 = vector.shape_cast %4 : vector<1x64x32xf32> to vector<64x32xf32>
    %c0_9 = arith.constant 0 : index
    %c0_10 = arith.constant 0 : index
    %6 = vector.load %arg2[%c0_9, %c0_10] : memref<32x128xf32, #tpu.memory_space<vmem>>, vector<32x128xf32>
    %cst_11 = arith.constant dense<0.000000e+00> : vector<64x128xf32>
    %7 = tpu.matmul %5, %6, %cst_11 {dimension_numbers = #tpu.dot_dimension_numbers<[1], [0], [0], [1], [0, 0, 1, 1], [], []>} : vector<64x32xf32>, vector<32x128xf32>, vector<64x128xf32> -> vector<64x128xf32>
    %c0_12 = arith.constant 0 : index
    %c0_13 = arith.constant 0 : index
    %8 = vector.load %arg4[%c0_12, %c0_13] : memref<1x128xf32, #tpu.memory_space<vmem>>, vector<1x128xf32>
    %9 = vector.broadcast %8 : vector<1x128xf32> to vector<64x128xf32>
    %10 = arith.addf %7, %9 : vector<64x128xf32>
    %c0_14 = arith.constant 0 : index
    %c0_15 = arith.constant 0 : index
    %11 = vector.load %arg3[%c0_14, %c0_15] : memref<32x128xf32, #tpu.memory_space<vmem>>, vector<32x128xf32>
    %cst_16 = arith.constant dense<0.000000e+00> : vector<64x128xf32>
    %12 = tpu.matmul %5, %11, %cst_16 {dimension_numbers = #tpu.dot_dimension_numbers<[1], [0], [0], [1], [0, 0, 1, 1], [], []>} : vector<64x32xf32>, vector<32x128xf32>, vector<64x128xf32> -> vector<64x128xf32>
    %c0_17 = arith.constant 0 : index
    %c0_18 = arith.constant 0 : index
    %13 = vector.load %arg5[%c0_17, %c0_18] : memref<1x128xf32, #tpu.memory_space<vmem>>, vector<1x128xf32>
    %14 = vector.broadcast %13 : vector<1x128xf32> to vector<64x128xf32>
    %15 = arith.addf %12, %14 : vector<64x128xf32>
    %16 = vector.extract_strided_slice %10 {offsets = [0, 0], sizes = [8, 128], strides = [1, 1]} : vector<64x128xf32> to vector<8x128xf32>
    %c1 = arith.constant 1 : index
    %c1_19 = arith.constant 1 : index
    %c0_20 = arith.constant 0 : index
    %17 = vector.load %arg11[%c1, %c1_19, %c0_20] : memref<10x10x128xf32, #tpu.memory_space<vmem>>, vector<1x8x128xf32>
    %18 = vector.shape_cast %17 : vector<1x8x128xf32> to vector<8x128xf32>
    %19 = vector.shape_cast %16 : vector<8x128xf32> to vector<1x8x128xf32>
    tpu.vector_store %arg11[%c1, %c1_19, %c0_20], %19 {strides = array<i32>} : memref<10x10x128xf32, #tpu.memory_space<vmem>>, vector<1x8x128xf32>,
    %20 = vector.extract_strided_slice %15 {offsets = [0, 0], sizes = [8, 128], strides = [1, 1]} : vector<64x128xf32> to vector<8x128xf32>
    %c1_21 = arith.constant 1 : index
    %c1_22 = arith.constant 1 : index
    %c0_23 = arith.constant 0 : index
    %21 = vector.load %arg12[%c1_21, %c1_22, %c0_23] : memref<10x10x128xf32, #tpu.memory_space<vmem>>, vector<1x8x128xf32>
    %22 = vector.shape_cast %21 : vector<1x8x128xf32> to vector<8x128xf32>
    %23 = vector.shape_cast %20 : vector<8x128xf32> to vector<1x8x128xf32>
    tpu.vector_store %arg12[%c1_21, %c1_22, %c0_23], %23 {strides = array<i32>} : memref<10x10x128xf32, #tpu.memory_space<vmem>>, vector<1x8x128xf32>,
    %24 = vector.extract_strided_slice %10 {offsets = [8, 0], sizes = [8, 128], strides = [1, 1]} : vector<64x128xf32> to vector<8x128xf32>
    %c2 = arith.constant 2 : index
    %c1_24 = arith.constant 1 : index
    %c0_25 = arith.constant 0 : index
    %25 = vector.load %arg11[%c2, %c1_24, %c0_25] : memref<10x10x128xf32, #tpu.memory_space<vmem>>, vector<1x8x128xf32>
    %26 = vector.shape_cast %25 : vector<1x8x128xf32> to vector<8x128xf32>
    %27 = vector.shape_cast %24 : vector<8x128xf32> to vector<1x8x128xf32>
    tpu.vector_store %arg11[%c2, %c1_24, %c0_25], %27 {strides = array<i32>} : memref<10x10x128xf32, #tpu.memory_space<vmem>>, vector<1x8x128xf32>,
    %28 = vector.extract_strided_slice %15 {offsets = [8, 0], sizes = [8, 128], strides = [1, 1]} : vector<64x128xf32> to vector<8x128xf32>
    %c2_26 = arith.constant 2 : index
    %c1_27 = arith.constant 1 : index
    %c0_28 = arith.constant 0 : index
    %29 = vector.load %arg12[%c2_26, %c1_27, %c0_28] : memref<10x10x128xf32, #tpu.memory_space<vmem>>, vector<1x8x128xf32>
    %30 = vector.shape_cast %29 : vector<1x8x128xf32> to vector<8x128xf32>
    %31 = vector.shape_cast %28 : vector<8x128xf32> to vector<1x8x128xf32>
    tpu.vector_store %arg12[%c2_26, %c1_27, %c0_28], %31 {strides = array<i32>} : memref<10x10x128xf32, #tpu.memory_space<vmem>>, vector<1x8x128xf32>,
    %32 = vector.extract_strided_slice %10 {offsets = [16, 0], sizes = [8, 128], strides = [1, 1]} : vector<64x128xf32> to vector<8x128xf32>
    %c3 = arith.constant 3 : index
    %c1_29 = arith.constant 1 : index
    %c0_30 = arith.constant 0 : index
    %33 = vector.load %arg11[%c3, %c1_29, %c0_30] : memref<10x10x128xf32, #tpu.memory_space<vmem>>, vector<1x8x128xf32>
    %34 = vector.shape_cast %33 : vector<1x8x128xf32> to vector<8x128xf32>
    %35 = vector.shape_cast %32 : vector<8x128xf32> to vector<1x8x128xf32>
    tpu.vector_store %arg11[%c3, %c1_29, %c0_30], %35 {strides = array<i32>} : memref<10x10x128xf32, #tpu.memory_space<vmem>>, vector<1x8x128xf32>,
    %36 = vector.extract_strided_slice %15 {offsets = [16, 0], sizes = [8, 128], strides = [1, 1]} : vector<64x128xf32> to vector<8x128xf32>
    %c3_31 = arith.constant 3 : index
    %c1_32 = arith.constant 1 : index
    %c0_33 = arith.constant 0 : index
    %37 = vector.load %arg12[%c3_31, %c1_32, %c0_33] : memref<10x10x128xf32, #tpu.memory_space<vmem>>, vector<1x8x128xf32>
    %38 = vector.shape_cast %37 : vector<1x8x128xf32> to vector<8x128xf32>
    %39 = vector.shape_cast %36 : vector<8x128xf32> to vector<1x8x128xf32>
    tpu.vector_store %arg12[%c3_31, %c1_32, %c0_33], %39 {strides = array<i32>} : memref<10x10x128xf32, #tpu.memory_space<vmem>>, vector<1x8x128xf32>,
    %40 = vector.extract_strided_slice %10 {offsets = [24, 0], sizes = [8, 128], strides = [1, 1]} : vector<64x128xf32> to vector<8x128xf32>
    %c4 = arith.constant 4 : index
    %c1_34 = arith.constant 1 : index
    %c0_35 = arith.constant 0 : index
    %41 = vector.load %arg11[%c4, %c1_34, %c0_35] : memref<10x10x128xf32, #tpu.memory_space<vmem>>, vector<1x8x128xf32>
    %42 = vector.shape_cast %41 : vector<1x8x128xf32> to vector<8x128xf32>
    %43 = vector.shape_cast %40 : vector<8x128xf32> to vector<1x8x128xf32>
    tpu.vector_store %arg11[%c4, %c1_34, %c0_35], %43 {strides = array<i32>} : memref<10x10x128xf32, #tpu.memory_space<vmem>>, vector<1x8x128xf32>,
    %44 = vector.extract_strided_slice %15 {offsets = [24, 0], sizes = [8, 128], strides = [1, 1]} : vector<64x128xf32> to vector<8x128xf32>
    %c4_36 = arith.constant 4 : index
    %c1_37 = arith.constant 1 : index
    %c0_38 = arith.constant 0 : index
    %45 = vector.load %arg12[%c4_36, %c1_37, %c0_38] : memref<10x10x128xf32, #tpu.memory_space<vmem>>, vector<1x8x128xf32>
    %46 = vector.shape_cast %45 : vector<1x8x128xf32> to vector<8x128xf32>
    %47 = vector.shape_cast %44 : vector<8x128xf32> to vector<1x8x128xf32>
    tpu.vector_store %arg12[%c4_36, %c1_37, %c0_38], %47 {strides = array<i32>} : memref<10x10x128xf32, #tpu.memory_space<vmem>>, vector<1x8x128xf32>,
    %48 = vector.extract_strided_slice %10 {offsets = [32, 0], sizes = [8, 128], strides = [1, 1]} : vector<64x128xf32> to vector<8x128xf32>
    %c5 = arith.constant 5 : index
    %c1_39 = arith.constant 1 : index
    %c0_40 = arith.constant 0 : index
    %49 = vector.load %arg11[%c5, %c1_39, %c0_40] : memref<10x10x128xf32, #tpu.memory_space<vmem>>, vector<1x8x128xf32>
    %50 = vector.shape_cast %49 : vector<1x8x128xf32> to vector<8x128xf32>
    %51 = vector.shape_cast %48 : vector<8x128xf32> to vector<1x8x128xf32>
    tpu.vector_store %arg11[%c5, %c1_39, %c0_40], %51 {strides = array<i32>} : memref<10x10x128xf32, #tpu.memory_space<vmem>>, vector<1x8x128xf32>,
    %52 = vector.extract_strided_slice %15 {offsets = [32, 0], sizes = [8, 128], strides = [1, 1]} : vector<64x128xf32> to vector<8x128xf32>
    %c5_41 = arith.constant 5 : index
    %c1_42 = arith.constant 1 : index
    %c0_43 = arith.constant 0 : index
    %53 = vector.load %arg12[%c5_41, %c1_42, %c0_43] : memref<10x10x128xf32, #tpu.memory_space<vmem>>, vector<1x8x128xf32>
    %54 = vector.shape_cast %53 : vector<1x8x128xf32> to vector<8x128xf32>
    %55 = vector.shape_cast %52 : vector<8x128xf32> to vector<1x8x128xf32>
    tpu.vector_store %arg12[%c5_41, %c1_42, %c0_43], %55 {strides = array<i32>} : memref<10x10x128xf32, #tpu.memory_space<vmem>>, vector<1x8x128xf32>,
    %56 = vector.extract_strided_slice %10 {offsets = [40, 0], sizes = [8, 128], strides = [1, 1]} : vector<64x128xf32> to vector<8x128xf32>
    %c6 = arith.constant 6 : index
    %c1_44 = arith.constant 1 : index
    %c0_45 = arith.constant 0 : index
    %57 = vector.load %arg11[%c6, %c1_44, %c0_45] : memref<10x10x128xf32, #tpu.memory_space<vmem>>, vector<1x8x128xf32>
    %58 = vector.shape_cast %57 : vector<1x8x128xf32> to vector<8x128xf32>
    %59 = vector.shape_cast %56 : vector<8x128xf32> to vector<1x8x128xf32>
    tpu.vector_store %arg11[%c6, %c1_44, %c0_45], %59 {strides = array<i32>} : memref<10x10x128xf32, #tpu.memory_space<vmem>>, vector<1x8x128xf32>,
    %60 = vector.extract_strided_slice %15 {offsets = [40, 0], sizes = [8, 128], strides = [1, 1]} : vector<64x128xf32> to vector<8x128xf32>
    %c6_46 = arith.constant 6 : index
    %c1_47 = arith.constant 1 : index
    %c0_48 = arith.constant 0 : index
    %61 = vector.load %arg12[%c6_46, %c1_47, %c0_48] : memref<10x10x128xf32, #tpu.memory_space<vmem>>, vector<1x8x128xf32>
    %62 = vector.shape_cast %61 : vector<1x8x128xf32> to vector<8x128xf32>
    %63 = vector.shape_cast %60 : vector<8x128xf32> to vector<1x8x128xf32>
    tpu.vector_store %arg12[%c6_46, %c1_47, %c0_48], %63 {strides = array<i32>} : memref<10x10x128xf32, #tpu.memory_space<vmem>>, vector<1x8x128xf32>,
    %64 = vector.extract_strided_slice %10 {offsets = [48, 0], sizes = [8, 128], strides = [1, 1]} : vector<64x128xf32> to vector<8x128xf32>
    %c7 = arith.constant 7 : index
    %c1_49 = arith.constant 1 : index
    %c0_50 = arith.constant 0 : index
    %65 = vector.load %arg11[%c7, %c1_49, %c0_50] : memref<10x10x128xf32, #tpu.memory_space<vmem>>, vector<1x8x128xf32>
    %66 = vector.shape_cast %65 : vector<1x8x128xf32> to vector<8x128xf32>
    %67 = vector.shape_cast %64 : vector<8x128xf32> to vector<1x8x128xf32>
    tpu.vector_store %arg11[%c7, %c1_49, %c0_50], %67 {strides = array<i32>} : memref<10x10x128xf32, #tpu.memory_space<vmem>>, vector<1x8x128xf32>,
    %68 = vector.extract_strided_slice %15 {offsets = [48, 0], sizes = [8, 128], strides = [1, 1]} : vector<64x128xf32> to vector<8x128xf32>
    %c7_51 = arith.constant 7 : index
    %c1_52 = arith.constant 1 : index
    %c0_53 = arith.constant 0 : index
    %69 = vector.load %arg12[%c7_51, %c1_52, %c0_53] : memref<10x10x128xf32, #tpu.memory_space<vmem>>, vector<1x8x128xf32>
    %70 = vector.shape_cast %69 : vector<1x8x128xf32> to vector<8x128xf32>
    %71 = vector.shape_cast %68 : vector<8x128xf32> to vector<1x8x128xf32>
    tpu.vector_store %arg12[%c7_51, %c1_52, %c0_53], %71 {strides = array<i32>} : memref<10x10x128xf32, #tpu.memory_space<vmem>>, vector<1x8x128xf32>,
    %72 = vector.extract_strided_slice %10 {offsets = [56, 0], sizes = [8, 128], strides = [1, 1]} : vector<64x128xf32> to vector<8x128xf32>
    %c8 = arith.constant 8 : index
    %c1_54 = arith.constant 1 : index
    %c0_55 = arith.constant 0 : index
    %73 = vector.load %arg11[%c8, %c1_54, %c0_55] : memref<10x10x128xf32, #tpu.memory_space<vmem>>, vector<1x8x128xf32>
    %74 = vector.shape_cast %73 : vector<1x8x128xf32> to vector<8x128xf32>
    %75 = vector.shape_cast %72 : vector<8x128xf32> to vector<1x8x128xf32>
    tpu.vector_store %arg11[%c8, %c1_54, %c0_55], %75 {strides = array<i32>} : memref<10x10x128xf32, #tpu.memory_space<vmem>>, vector<1x8x128xf32>,
    %76 = vector.extract_strided_slice %15 {offsets = [56, 0], sizes = [8, 128], strides = [1, 1]} : vector<64x128xf32> to vector<8x128xf32>
    %c8_56 = arith.constant 8 : index
    %c1_57 = arith.constant 1 : index
    %c0_58 = arith.constant 0 : index
    %77 = vector.load %arg12[%c8_56, %c1_57, %c0_58] : memref<10x10x128xf32, #tpu.memory_space<vmem>>, vector<1x8x128xf32>
    %78 = vector.shape_cast %77 : vector<1x8x128xf32> to vector<8x128xf32>
    %79 = vector.shape_cast %76 : vector<8x128xf32> to vector<1x8x128xf32>
    tpu.vector_store %arg12[%c8_56, %c1_57, %c0_58], %79 {strides = array<i32>} : memref<10x10x128xf32, #tpu.memory_space<vmem>>, vector<1x8x128xf32>,
    %c0_59 = arith.constant 0 : index
    %c0_60 = arith.constant 0 : index
    %c0_61 = arith.constant 0 : index
    %80 = vector.load %arg11[%c0_59, %c0_60, %c0_61] : memref<10x10x128xf32, #tpu.memory_space<vmem>>, vector<8x8x128xf32>
    %c0_62 = arith.constant 0 : index
    %c1_63 = arith.constant 1 : index
    %c0_64 = arith.constant 0 : index
    %81 = vector.load %arg11[%c0_62, %c1_63, %c0_64] : memref<10x10x128xf32, #tpu.memory_space<vmem>>, vector<8x8x128xf32>
    %82 = arith.maximumf %80, %81 : vector<8x8x128xf32>
    %c0_65 = arith.constant 0 : index
    %c2_66 = arith.constant 2 : index
    %c0_67 = arith.constant 0 : index
    %83 = vector.load %arg11[%c0_65, %c2_66, %c0_67] : memref<10x10x128xf32, #tpu.memory_space<vmem>>, vector<8x8x128xf32>
    %84 = arith.maximumf %82, %83 : vector<8x8x128xf32>
    %c1_68 = arith.constant 1 : index
    %c0_69 = arith.constant 0 : index
    %c0_70 = arith.constant 0 : index
    %85 = vector.load %arg11[%c1_68, %c0_69, %c0_70] : memref<10x10x128xf32, #tpu.memory_space<vmem>>, vector<8x8x128xf32>
    %86 = arith.maximumf %84, %85 : vector<8x8x128xf32>
    %c1_71 = arith.constant 1 : index
    %c1_72 = arith.constant 1 : index
    %c0_73 = arith.constant 0 : index
    %87 = vector.load %arg11[%c1_71, %c1_72, %c0_73] : memref<10x10x128xf32, #tpu.memory_space<vmem>>, vector<8x8x128xf32>
    %88 = arith.maximumf %86, %87 : vector<8x8x128xf32>
    %c1_74 = arith.constant 1 : index
    %c2_75 = arith.constant 2 : index
    %c0_76 = arith.constant 0 : index
    %89 = vector.load %arg11[%c1_74, %c2_75, %c0_76] : memref<10x10x128xf32, #tpu.memory_space<vmem>>, vector<8x8x128xf32>
    %90 = arith.maximumf %88, %89 : vector<8x8x128xf32>
    %c2_77 = arith.constant 2 : index
    %c0_78 = arith.constant 0 : index
    %c0_79 = arith.constant 0 : index
    %91 = vector.load %arg11[%c2_77, %c0_78, %c0_79] : memref<10x10x128xf32, #tpu.memory_space<vmem>>, vector<8x8x128xf32>
    %92 = arith.maximumf %90, %91 : vector<8x8x128xf32>
    %c2_80 = arith.constant 2 : index
    %c1_81 = arith.constant 1 : index
    %c0_82 = arith.constant 0 : index
    %93 = vector.load %arg11[%c2_80, %c1_81, %c0_82] : memref<10x10x128xf32, #tpu.memory_space<vmem>>, vector<8x8x128xf32>
    %94 = arith.maximumf %92, %93 : vector<8x8x128xf32>
    %c2_83 = arith.constant 2 : index
    %c2_84 = arith.constant 2 : index
    %c0_85 = arith.constant 0 : index
    %95 = vector.load %arg11[%c2_83, %c2_84, %c0_85] : memref<10x10x128xf32, #tpu.memory_space<vmem>>, vector<8x8x128xf32>
    %96 = arith.maximumf %94, %95 : vector<8x8x128xf32>
    %cst_86 = arith.constant 0.000000e+00 : f32
    %97 = vector.broadcast %cst_86 : f32 to vector<8x8x128xf32>
    %cst_87 = arith.constant 0.000000e+00 : f32
    %98 = vector.broadcast %cst_87 : f32 to vector<8x8x128xf32>
    %c0_88 = arith.constant 0 : index
    %c0_89 = arith.constant 0 : index
    %c0_90 = arith.constant 0 : index
    %99 = vector.load %arg11[%c0_88, %c0_89, %c0_90] : memref<10x10x128xf32, #tpu.memory_space<vmem>>, vector<8x8x128xf32>
    %100 = arith.subf %99, %96 : vector<8x8x128xf32>
    %101 = math.exp %100 : vector<8x8x128xf32>
    %102 = arith.addf %97, %101 : vector<8x8x128xf32>
    %c0_91 = arith.constant 0 : index
    %c0_92 = arith.constant 0 : index
    %c0_93 = arith.constant 0 : index
    %103 = vector.load %arg12[%c0_91, %c0_92, %c0_93] : memref<10x10x128xf32, #tpu.memory_space<vmem>>, vector<8x8x128xf32>
    %104 = arith.mulf %101, %103 : vector<8x8x128xf32>
    %105 = arith.addf %98, %104 : vector<8x8x128xf32>
    %c0_94 = arith.constant 0 : index
    %c1_95 = arith.constant 1 : index
    %c0_96 = arith.constant 0 : index
    %106 = vector.load %arg11[%c0_94, %c1_95, %c0_96] : memref<10x10x128xf32, #tpu.memory_space<vmem>>, vector<8x8x128xf32>
    %107 = arith.subf %106, %96 : vector<8x8x128xf32>
    %108 = math.exp %107 : vector<8x8x128xf32>
    %109 = arith.addf %102, %108 : vector<8x8x128xf32>
    %c0_97 = arith.constant 0 : index
    %c1_98 = arith.constant 1 : index
    %c0_99 = arith.constant 0 : index
    %110 = vector.load %arg12[%c0_97, %c1_98, %c0_99] : memref<10x10x128xf32, #tpu.memory_space<vmem>>, vector<8x8x128xf32>
    %111 = arith.mulf %108, %110 : vector<8x8x128xf32>
    %112 = arith.addf %105, %111 : vector<8x8x128xf32>
    %c0_100 = arith.constant 0 : index
    %c2_101 = arith.constant 2 : index
    %c0_102 = arith.constant 0 : index
    %113 = vector.load %arg11[%c0_100, %c2_101, %c0_102] : memref<10x10x128xf32, #tpu.memory_space<vmem>>, vector<8x8x128xf32>
    %114 = arith.subf %113, %96 : vector<8x8x128xf32>
    %115 = math.exp %114 : vector<8x8x128xf32>
    %116 = arith.addf %109, %115 : vector<8x8x128xf32>
    %c0_103 = arith.constant 0 : index
    %c2_104 = arith.constant 2 : index
    %c0_105 = arith.constant 0 : index
    %117 = vector.load %arg12[%c0_103, %c2_104, %c0_105] : memref<10x10x128xf32, #tpu.memory_space<vmem>>, vector<8x8x128xf32>
    %118 = arith.mulf %115, %117 : vector<8x8x128xf32>
    %119 = arith.addf %112, %118 : vector<8x8x128xf32>
    %c1_106 = arith.constant 1 : index
    %c0_107 = arith.constant 0 : index
    %c0_108 = arith.constant 0 : index
    %120 = vector.load %arg11[%c1_106, %c0_107, %c0_108] : memref<10x10x128xf32, #tpu.memory_space<vmem>>, vector<8x8x128xf32>
    %121 = arith.subf %120, %96 : vector<8x8x128xf32>
    %122 = math.exp %121 : vector<8x8x128xf32>
    %123 = arith.addf %116, %122 : vector<8x8x128xf32>
    %c1_109 = arith.constant 1 : index
    %c0_110 = arith.constant 0 : index
    %c0_111 = arith.constant 0 : index
    %124 = vector.load %arg12[%c1_109, %c0_110, %c0_111] : memref<10x10x128xf32, #tpu.memory_space<vmem>>, vector<8x8x128xf32>
    %125 = arith.mulf %122, %124 : vector<8x8x128xf32>
    %126 = arith.addf %119, %125 : vector<8x8x128xf32>
    %c1_112 = arith.constant 1 : index
    %c1_113 = arith.constant 1 : index
    %c0_114 = arith.constant 0 : index
    %127 = vector.load %arg11[%c1_112, %c1_113, %c0_114] : memref<10x10x128xf32, #tpu.memory_space<vmem>>, vector<8x8x128xf32>
    %128 = arith.subf %127, %96 : vector<8x8x128xf32>
    %129 = math.exp %128 : vector<8x8x128xf32>
    %130 = arith.addf %123, %129 : vector<8x8x128xf32>
    %c1_115 = arith.constant 1 : index
    %c1_116 = arith.constant 1 : index
    %c0_117 = arith.constant 0 : index
    %131 = vector.load %arg12[%c1_115, %c1_116, %c0_117] : memref<10x10x128xf32, #tpu.memory_space<vmem>>, vector<8x8x128xf32>
    %132 = arith.mulf %129, %131 : vector<8x8x128xf32>
    %133 = arith.addf %126, %132 : vector<8x8x128xf32>
    %c1_118 = arith.constant 1 : index
    %c2_119 = arith.constant 2 : index
    %c0_120 = arith.constant 0 : index
    %134 = vector.load %arg11[%c1_118, %c2_119, %c0_120] : memref<10x10x128xf32, #tpu.memory_space<vmem>>, vector<8x8x128xf32>
    %135 = arith.subf %134, %96 : vector<8x8x128xf32>
    %136 = math.exp %135 : vector<8x8x128xf32>
    %137 = arith.addf %130, %136 : vector<8x8x128xf32>
    %c1_121 = arith.constant 1 : index
    %c2_122 = arith.constant 2 : index
    %c0_123 = arith.constant 0 : index
    %138 = vector.load %arg12[%c1_121, %c2_122, %c0_123] : memref<10x10x128xf32, #tpu.memory_space<vmem>>, vector<8x8x128xf32>
    %139 = arith.mulf %136, %138 : vector<8x8x128xf32>
    %140 = arith.addf %133, %139 : vector<8x8x128xf32>
    %c2_124 = arith.constant 2 : index
    %c0_125 = arith.constant 0 : index
    %c0_126 = arith.constant 0 : index
    %141 = vector.load %arg11[%c2_124, %c0_125, %c0_126] : memref<10x10x128xf32, #tpu.memory_space<vmem>>, vector<8x8x128xf32>
    %142 = arith.subf %141, %96 : vector<8x8x128xf32>
    %143 = math.exp %142 : vector<8x8x128xf32>
    %144 = arith.addf %137, %143 : vector<8x8x128xf32>
    %c2_127 = arith.constant 2 : index
    %c0_128 = arith.constant 0 : index
    %c0_129 = arith.constant 0 : index
    %145 = vector.load %arg12[%c2_127, %c0_128, %c0_129] : memref<10x10x128xf32, #tpu.memory_space<vmem>>, vector<8x8x128xf32>
    %146 = arith.mulf %143, %145 : vector<8x8x128xf32>
    %147 = arith.addf %140, %146 : vector<8x8x128xf32>
    %c2_130 = arith.constant 2 : index
    %c1_131 = arith.constant 1 : index
    %c0_132 = arith.constant 0 : index
    %148 = vector.load %arg11[%c2_130, %c1_131, %c0_132] : memref<10x10x128xf32, #tpu.memory_space<vmem>>, vector<8x8x128xf32>
    %149 = arith.subf %148, %96 : vector<8x8x128xf32>
    %150 = math.exp %149 : vector<8x8x128xf32>
    %151 = arith.addf %144, %150 : vector<8x8x128xf32>
    %c2_133 = arith.constant 2 : index
    %c1_134 = arith.constant 1 : index
    %c0_135 = arith.constant 0 : index
    %152 = vector.load %arg12[%c2_133, %c1_134, %c0_135] : memref<10x10x128xf32, #tpu.memory_space<vmem>>, vector<8x8x128xf32>
    %153 = arith.mulf %150, %152 : vector<8x8x128xf32>
    %154 = arith.addf %147, %153 : vector<8x8x128xf32>
    %c2_136 = arith.constant 2 : index
    %c2_137 = arith.constant 2 : index
    %c0_138 = arith.constant 0 : index
    %155 = vector.load %arg11[%c2_136, %c2_137, %c0_138] : memref<10x10x128xf32, #tpu.memory_space<vmem>>, vector<8x8x128xf32>
    %156 = arith.subf %155, %96 : vector<8x8x128xf32>
    %157 = math.exp %156 : vector<8x8x128xf32>
    %158 = arith.addf %151, %157 : vector<8x8x128xf32>
    %c2_139 = arith.constant 2 : index
    %c2_140 = arith.constant 2 : index
    %c0_141 = arith.constant 0 : index
    %159 = vector.load %arg12[%c2_139, %c2_140, %c0_141] : memref<10x10x128xf32, #tpu.memory_space<vmem>>, vector<8x8x128xf32>
    %160 = arith.mulf %157, %159 : vector<8x8x128xf32>
    %161 = arith.addf %154, %160 : vector<8x8x128xf32>
    %162 = tpu.reciprocal %158 {approx = true} : vector<8x8x128xf32> -> vector<8x8x128xf32>
    %163 = arith.mulf %161, %162 : vector<8x8x128xf32>
    %c0_142 = arith.constant 0 : index
    %c0_143 = arith.constant 0 : index
    %164 = vector.load %arg6[%c0_142, %c0_143] : memref<1x128xf32, #tpu.memory_space<vmem>>, vector<1x128xf32>
    %165 = vector.shape_cast %164 : vector<1x128xf32> to vector<1x1x128xf32>
    %166 = vector.broadcast %165 : vector<1x1x128xf32> to vector<8x8x128xf32>
    %167 = arith.addf %163, %166 : vector<8x8x128xf32>
    %168 = vector.shape_cast %167 : vector<8x8x128xf32> to vector<64x128xf32>
    %c0_144 = arith.constant 0 : index
    %c0_145 = arith.constant 0 : index
    %169 = vector.load %arg9[%c0_144, %c0_145] : memref<128x128xf32, #tpu.memory_space<vmem>>, vector<128x128xf32>
    %cst_146 = arith.constant dense<0.000000e+00> : vector<64x128xf32>
    %170 = tpu.matmul %168, %169, %cst_146 {dimension_numbers = #tpu.dot_dimension_numbers<[1], [0], [0], [1], [0, 0, 1, 1], [], []>} : vector<64x128xf32>, vector<128x128xf32>, vector<64x128xf32> -> vector<64x128xf32>
    %171 = arith.subf %168, %170 : vector<64x128xf32>
    %172 = arith.mulf %171, %171 : vector<64x128xf32>
    %cst_147 = arith.constant dense<0.000000e+00> : vector<64x128xf32>
    %173 = tpu.matmul %172, %169, %cst_147 {dimension_numbers = #tpu.dot_dimension_numbers<[1], [0], [0], [1], [0, 0, 1, 1], [], []>} : vector<64x128xf32>, vector<128x128xf32>, vector<64x128xf32> -> vector<64x128xf32>
    %cst_148 = arith.constant 9.99999974E-6 : f32
    %174 = vector.broadcast %cst_148 : f32 to vector<64x128xf32>
    %175 = arith.addf %173, %174 : vector<64x128xf32>
    %176 = math.rsqrt %175 : vector<64x128xf32>
    %177 = arith.mulf %171, %176 : vector<64x128xf32>
    %c0_149 = arith.constant 0 : index
    %c0_150 = arith.constant 0 : index
    %178 = vector.load %arg7[%c0_149, %c0_150] : memref<1x128xf32, #tpu.memory_space<vmem>>, vector<1x128xf32>
    %179 = vector.broadcast %178 : vector<1x128xf32> to vector<64x128xf32>
    %180 = arith.mulf %177, %179 : vector<64x128xf32>
    %c0_151 = arith.constant 0 : index
    %c0_152 = arith.constant 0 : index
    %181 = vector.load %arg8[%c0_151, %c0_152] : memref<1x128xf32, #tpu.memory_space<vmem>>, vector<1x128xf32>
    %182 = vector.broadcast %181 : vector<1x128xf32> to vector<64x128xf32>
    %183 = arith.addf %180, %182 : vector<64x128xf32>
    %c0_153 = arith.constant 0 : index
    %c0_154 = arith.constant 0 : index
    %c0_155 = arith.constant 0 : index
    %184 = vector.load %arg10[%c0_153, %c0_154, %c0_155] : memref<1x64x128xf32, #tpu.memory_space<vmem>>, vector<1x64x128xf32>
    %185 = vector.shape_cast %184 : vector<1x64x128xf32> to vector<64x128xf32>
    %186 = vector.shape_cast %183 : vector<64x128xf32> to vector<1x64x128xf32>
    tpu.vector_store %arg10[%c0_153, %c0_154, %c0_155], %186 {strides = array<i32>} : memref<1x64x128xf32, #tpu.memory_space<vmem>>, vector<1x64x128xf32>,
    return
  }
  func.func @transform_0(%arg0: i32) -> (i32, i32, i32) {
    %c0_i32 = arith.constant 0 : i32
    %c0_i32_0 = arith.constant 0 : i32
    %c0_i32_1 = arith.constant 0 : i32
    return %arg0, %c0_i32, %c0_i32_0 : i32, i32, i32
  }
  func.func @transform_1(%arg0: i32) -> (i32, i32) {
    %c0_i32 = arith.constant 0 : i32
    %c0_i32_0 = arith.constant 0 : i32
    %c0_i32_1 = arith.constant 0 : i32
    return %c0_i32, %c0_i32_0 : i32, i32
  }
  func.func @transform_2(%arg0: i32) -> (i32, i32) {
    %c0_i32 = arith.constant 0 : i32
    %c0_i32_0 = arith.constant 0 : i32
    %c0_i32_1 = arith.constant 0 : i32
    return %c0_i32, %c0_i32_0 : i32, i32
  }
  func.func @transform_3(%arg0: i32) -> (i32, i32) {
    %c0_i32 = arith.constant 0 : i32
    %c0_i32_0 = arith.constant 0 : i32
    %c0_i32_1 = arith.constant 0 : i32
    return %c0_i32, %c0_i32_0 : i32, i32
  }
  func.func @transform_4(%arg0: i32) -> (i32, i32) {
    %c0_i32 = arith.constant 0 : i32
    %c0_i32_0 = arith.constant 0 : i32
    %c0_i32_1 = arith.constant 0 : i32
    return %c0_i32, %c0_i32_0 : i32, i32
  }
  func.func @transform_5(%arg0: i32) -> (i32, i32) {
    %c0_i32 = arith.constant 0 : i32
    %c0_i32_0 = arith.constant 0 : i32
    %c0_i32_1 = arith.constant 0 : i32
    return %c0_i32, %c0_i32_0 : i32, i32
  }
  func.func @transform_6(%arg0: i32) -> (i32, i32) {
    %c0_i32 = arith.constant 0 : i32
    %c0_i32_0 = arith.constant 0 : i32
    %c0_i32_1 = arith.constant 0 : i32
    return %c0_i32, %c0_i32_0 : i32, i32
  }
  func.func @transform_7(%arg0: i32) -> (i32, i32) {
    %c0_i32 = arith.constant 0 : i32
    %c0_i32_0 = arith.constant 0 : i32
    %c0_i32_1 = arith.constant 0 : i32
    return %c0_i32, %c0_i32_0 : i32, i32
  }
  func.func @transform_8(%arg0: i32) -> (i32, i32) {
    %c0_i32 = arith.constant 0 : i32
    %c0_i32_0 = arith.constant 0 : i32
    %c0_i32_1 = arith.constant 0 : i32
    return %c0_i32, %c0_i32_0 : i32, i32
  }
  func.func @transform_9(%arg0: i32) -> (i32, i32, i32) {
    %c0_i32 = arith.constant 0 : i32
    %c0_i32_0 = arith.constant 0 : i32
    %c0_i32_1 = arith.constant 0 : i32
    return %arg0, %c0_i32, %c0_i32_0 : i32, i32, i32
  }
}

</mosaic_0001>

<bundles_post_ra>
// kernel: tpu_custom_call.1
= control target key start
LH: loop header
LB: loop body
LE: loop exit
PB: predicated region body
PF: predicated region fallthrough
CT: control target
= control target key end

     0   :  { %s3830_s0 = inlined_call_operand.hbm [shape: f32[2,64,32], index: 0, kind: input, shape index: {}]   ;;  %s3831_s1 = inlined_call_operand.hbm [shape: f32[32,128], index: 1, kind: input, shape index: {}]   ;;  %s3832_s2 = inlined_call_operand.hbm [shape: f32[32,128], index: 2, kind: input, shape index: {}]   ;;  %s3833_s3 = inlined_call_operand.hbm [shape: f32[1,128], index: 3, kind: input, shape index: {}]   ;;  %s3834_s4 = inlined_call_operand.hbm [shape: f32[1,128], index: 4, kind: input, shape index: {}]   ;;  %s3835_s5 = inlined_call_operand.hbm [shape: f32[1,128], index: 5, kind: input, shape index: {}]   ;;  %s3836_s6 = inlined_call_operand.hbm [shape: f32[1,128], index: 6, kind: input, shape index: {}]   ;;  %s3837_s7 = inlined_call_operand.hbm [shape: f32[1,128], index: 7, kind: input, shape index: {}]   ;;  %s3838_s8 = inlined_call_operand.hbm [shape: f32[128,128], index: 8, kind: input, shape index: {}]   ;;  %s3839_s9 = inlined_call_operand.hbm [shape: f32[2,64,128], index: 9, kind: output, shape index: {}]  }
   0x1   :  { %3847 = sst [smem:[#allocation26_spill]] %s3831_s1 }
   0x2   :  { %3848 = sst [smem:[#allocation27_spill]] %s3839_s9 }
   0x3   :  { %14 = vsyncpa [#allocation5], 0 }
   0x4   :  { %16 = vsyncpa [#allocation5 + $0x1], 0 }
   0x5   :  { %17 = vsyncpa [#allocation8], 0 }
   0x6   :  { %18 = vsyncpa [#allocation11], 0 }
   0x7   :  { %19 = vsyncpa [#allocation14], 0 }
   0x8   :  { %20 = vsyncpa [#allocation17], 0 }
   0x9   :  { %21 = vsyncpa [#allocation6], 0 }
   0xa   :  { %23 = vsyncpa [#allocation6 + $0x1], 0  ;;  %s2969_s30 = smov 0   ;;  %s2971_s10 = smov 0  }
   0xb   :  { %s2973_s11 = smov 0   ;;  %s2975_s12 = smov 0  }
   0xc LB: > { %s2904_s13 = smov [#allocation7]   ;;  %s2990_s15 = sadd.s32 4294967295, %s2902_s12   ;;  %s2902_s12 = sphi %s2975_s12, %s3877_s12   ;;  %s2898_s11 = sphi %s2973_s11, %s3876_s11   ;;  %s2894_s10 = sphi %s2971_s10, %s3875_s10   ;;  %s2890_s30 = sphi %s2969_s30, %s3874_s30  }
   0xd   : > { %s266_s14 = sshll.u32 %s2904_s13, 4  ;;  %p1925_p0 = scmp.ge.s32.totalorder %s2902_s12, 1  ;;  %s2995_s14 = int_to_ptr.vmem [resolvable:$true] %s266_s14 }
   0xe   : > { %p3843_p1 = scmp.eq.s32.totalorder %s2990_s15, 0  ;;  %p254_p2 = scmp.lt.s32.totalorder %s2902_s12, 3 }
   0xf   : > { %s2905_s17 = smov [#allocation10]   ;;  %s2906_s20 = smov [#allocation13]  }
  0x10   : > { %p2997_p3 = pnand %p1925_p0, %p254_p2  ;;  %s293_s18 = sshll.u32 %s2905_s17, 4  ;;  %s3010_s18 = int_to_ptr.vmem [resolvable:$true] %s293_s18 }
  0x11   : > { %s315_s21 = sshll.u32 %s2906_s20, 4  ;;  %s3851_s1 = sld [smem:[#allocation26_spill]]  ;;  %s3012_s21 = int_to_ptr.vmem [resolvable:$true] %s315_s21 }
  0x12   : > { %s3849_s16 = scalar_select %p2997_p3, 1, 0 }
  0x13   : > { %p2293_p5 = pneg %p2997_p3 }
  0x15   : > { %p3006_p6 = pnand %p2293_p5, %p3843_p1 }
  0x17   : > { %s2566_s24 = scalar_lea.hbm %s3851_s1, 512  ;;  %p3022_p8 = pneg %p3006_p6 }
  0x18   : > { %p2567_p7 = scmp.ne.s32.totalorder %s3851_s1, %s2566_s24  ;;  %p2573_p11 = scmp.lt.u32.totalorder %s2566_s24, %s3851_s1 }
  0x1a   : > { %p2569_p9 = pnand %p3022_p8, %p2567_p7 }
  0x1c   : > { %p2570_p10 = pneg %p2569_p9 }
  0x1e   : > { %p2575_p12 = pnand %p2573_p11, %p2570_p10 }
  0x20   : > { %2578 = shalt.err (!%p2575_p12)
}
  0x21   : > { %s2579_s13 = scalar_lea.vmem %s2995_s14, 512  ;;  %p2587_p5 = scmp.lt.s32.totalorder %s2995_s14, %s2995_s14 }
  0x22   : > { %p2580_p13 = scmp.ne.s32.totalorder %s2995_s14, %s2579_s13  ;;  %p2588_p4 = scmp.lt.s32.totalorder %s2579_s13, %s2579_s13 }
  0x24   : > { %p2582_p0 = pnand %p2580_p13, %p3022_p8  ;;  %p2589_p7 = por %p2588_p4, %p2587_p5 }
  0x26   : > { %p2583_p2 = pneg %p2582_p0 }
  0x28   : > { %p2590_p9 = pnand %p2589_p7, %p2583_p2 }
  0x2a   : > { %2593 = shalt.err (!%p2590_p9)
}
  0x2b   : > { %s3841_s17 = smov 128   ;;  %s3845_s20 = smov 8  }
  0x2c   : > { %2296 = dma.hbm_to_vmem [thread:$0]  (!%p3006_p6), %s3851_s1, 512, %s2995_s14, [#allocation8], %s3841_s17, %s3841_s17, %s3845_s20  }
  0x2d   : > { %s2594_s26 = scalar_lea.hbm %s3833_s3, 16 }
  0x2e   : > { %p2595_p4 = scmp.ne.s32.totalorder %s3833_s3, %s2594_s26  ;;  %p2601_p12 = scmp.lt.u32.totalorder %s2594_s26, %s3833_s3 }
  0x30   : > { %p2597_p10 = pnand %p2595_p4, %p3022_p8 }
  0x32   : > { %p2598_p11 = pneg %p2597_p10 }
  0x34   : > { %p2603_p13 = pnand %p2601_p12, %p2598_p11 }
  0x36   : > { %2606 = shalt.err (!%p2603_p13)
}
  0x37   : > { %s2607_s14 = scalar_lea.vmem %s3010_s18, 16  ;;  %s2614_s22 = scalar_lea.vmem %s3010_s18, 32 }
  0x38   : > { %p2608_p0 = scmp.ne.s32.totalorder %s3010_s18, %s2607_s14  ;;  %p2615_p7 = scmp.lt.s32.totalorder %s3010_s18, %s3010_s18 }
  0x39   : > { %p2616_p9 = scmp.lt.s32.totalorder %s2614_s22, %s2607_s14 }
  0x3a   : > { %p2610_p2 = pnand %p2608_p0, %p3022_p8 }
  0x3b   : > { %p2617_p4 = por %p2616_p9, %p2615_p7 }
  0x3c   : > { %p2611_p5 = pneg %p2610_p2 }
  0x3e   : > { %p2618_p10 = pnand %p2617_p4, %p2611_p5 }
  0x40   : > { %2621 = shalt.err (!%p2618_p10)
}
  0x41   : > { %2302 = dma.hbm_to_vmem [thread:$0]  (!%p3006_p6), %s3833_s3, 16, %s3010_s18, [#allocation11]  }
  0x42   : > { %s2622_s26 = scalar_lea.hbm %s3835_s5, 16 }
  0x43   : > { %p2623_p11 = scmp.ne.s32.totalorder %s3835_s5, %s2622_s26  ;;  %p2629_p0 = scmp.lt.u32.totalorder %s2622_s26, %s3835_s5 }
  0x45   : > { %p2625_p12 = pnand %p2623_p11, %p3022_p8 }
  0x47   : > { %p2626_p13 = pneg %p2625_p12 }
  0x49   : > { %p2631_p2 = pnand %p2629_p0, %p2626_p13 }
  0x4b   : > { %2634 = shalt.err (!%p2631_p2)
}
  0x4c   : > { %s2635_s18 = scalar_lea.vmem %s3012_s21, 16  ;;  %s2642_s22 = scalar_lea.vmem %s3012_s21, 32 }
  0x4d   : > { %p2636_p5 = scmp.ne.s32.totalorder %s3012_s21, %s2635_s18  ;;  %p2643_p4 = scmp.lt.s32.totalorder %s3012_s21, %s3012_s21 }
  0x4e   : > { %p2644_p10 = scmp.lt.s32.totalorder %s2642_s22, %s2635_s18 }
  0x4f   : > { %p2638_p7 = pnand %p2636_p5, %p3022_p8 }
  0x50   : > { %p2645_p11 = por %p2644_p10, %p2643_p4 }
  0x51   : > { %p2639_p9 = pneg %p2638_p7 }
  0x53   : > { %p2646_p12 = pnand %p2645_p11, %p2639_p9 }
  0x55   : > { %2649 = shalt.err (!%p2646_p12)
}
  0x56   : > { %2308 = dma.hbm_to_vmem [thread:$0]  (!%p3006_p6), %s3835_s5, 16, %s3012_s21, [#allocation14]  }
  0x57   : > { %s2909_s24 = smov [#allocation16]   ;;  %s2910_s26 = smov [#allocation9]  }
  0x58   : > { %s337_s25 = sshll.u32 %s2909_s24, 4  ;;  %s279_s28 = sshll.u32 %s2910_s26, 4  ;;  %s338_s25 = int_to_ptr.vmem [resolvable:$true] %s337_s25  ;;  %s280_s28 = int_to_ptr.vmem [resolvable:$true] %s279_s28 }
  0x59   : > { %s2650_s14 = scalar_lea.hbm %s3837_s7, 16 }
  0x5a   : > { %p2651_p13 = scmp.ne.s32.totalorder %s3837_s7, %s2650_s14  ;;  %p2657_p5 = scmp.lt.u32.totalorder %s2650_s14, %s3837_s7 }
  0x5c   : > { %p2653_p0 = pnand %p2651_p13, %p3022_p8 }
  0x5e   : > { %p2654_p2 = pneg %p2653_p0 }
  0x60   : > { %p2659_p7 = pnand %p2657_p5, %p2654_p2 }
  0x62   : > { %2662 = shalt.err (!%p2659_p7)
}
  0x63   : > { %s2663_s21 = scalar_lea.vmem %s338_s25, 16  ;;  %s2670_s23 = scalar_lea.vmem %s338_s25, 32 }
  0x64   : > { %p2664_p9 = scmp.ne.s32.totalorder %s338_s25, %s2663_s21  ;;  %p2671_p11 = scmp.lt.s32.totalorder %s338_s25, %s338_s25 }
  0x65   : > { %p2672_p12 = scmp.lt.s32.totalorder %s2670_s23, %s2663_s21 }
  0x66   : > { %p2666_p4 = pnand %p2664_p9, %p3022_p8 }
  0x67   : > { %p2673_p1 = por %p2672_p12, %p2671_p11 }
  0x68   : > { %p2667_p10 = pneg %p2666_p4 }
  0x6a   : > { %p2674_p3 = pnand %p2673_p1, %p2667_p10 }
  0x6c   : > { %2677 = shalt.err (!%p2674_p3)
}
  0x6d   : > { %2314 = dma.hbm_to_vmem [thread:$0]  (!%p3006_p6), %s3837_s7, 16, %s338_s25, [#allocation17]  }
  0x6e   : > { %s2678_s13 = scalar_lea.hbm %s3832_s2, 512 }
  0x6f   : > { %p2679_p13 = scmp.ne.s32.totalorder %s3832_s2, %s2678_s13  ;;  %p2685_p3 = scmp.lt.u32.totalorder %s2678_s13, %s3832_s2 }
  0x71   : > { %p2681_p0 = pnand %p2679_p13, %p3022_p8 }
  0x73   : > { %p2682_p1 = pneg %p2681_p0 }
  0x75   : > { %p2687_p2 = pnand %p2685_p3, %p2682_p1 }
  0x77   : > { %2690 = shalt.err (!%p2687_p2)
}
  0x78   : > { %s2691_s21 = scalar_lea.vmem %s280_s28, 512  ;;  %p2699_p4 = scmp.lt.s32.totalorder %s280_s28, %s280_s28 }
  0x79   : > { %p2692_p5 = scmp.ne.s32.totalorder %s280_s28, %s2691_s21  ;;  %p2700_p10 = scmp.lt.s32.totalorder %s2691_s21, %s2691_s21 }
  0x7b   : > { %p2694_p7 = pnand %p2692_p5, %p3022_p8  ;;  %p2701_p11 = por %p2700_p10, %p2699_p4 }
  0x7d   : > { %p2695_p9 = pneg %p2694_p7 }
  0x7f   : > { %p2702_p12 = pnand %p2701_p11, %p2695_p9 }
  0x81   : > { %2705 = shalt.err (!%p2702_p12)
}
  0x82   : > { %s3853_s25 = smov 128   ;;  %s2911_s26 = smov [#allocation12]  }
  0x83   : > { %2299 = dma.hbm_to_vmem [thread:$0]  (!%p3006_p6), %s3832_s2, 512, %s280_s28, [#allocation8], %s3853_s25, %s3853_s25, %s3845_s20  }
  0x84   : > { %s304_s17 = sshll.u32 %s2911_s26, 4  ;;  %s2912_s29 = smov [#allocation15]   ;;  %s305_s17 = int_to_ptr.vmem [resolvable:$true] %s304_s17 }
  0x85   : > { %s326_s13 = sshll.u32 %s2912_s29, 4  ;;  %s2706_s22 = scalar_lea.hbm %s3834_s4, 16  ;;  %s327_s13 = int_to_ptr.vmem [resolvable:$true] %s326_s13 }
  0x86   : > { %p2707_p13 = scmp.ne.s32.totalorder %s3834_s4, %s2706_s22  ;;  %p2713_p3 = scmp.lt.u32.totalorder %s2706_s22, %s3834_s4 }
  0x88   : > { %p2709_p0 = pnand %p2707_p13, %p3022_p8 }
  0x8a   : > { %p2710_p1 = pneg %p2709_p0 }
  0x8c   : > { %p2715_p2 = pnand %p2713_p3, %p2710_p1 }
  0x8e   : > { %2718 = shalt.err (!%p2715_p2)
}
  0x8f   : > { %s2719_s28 = scalar_lea.vmem %s305_s17, 16  ;;  %s2726_s24 = scalar_lea.vmem %s305_s17, 32 }
  0x90   : > { %p2720_p5 = scmp.ne.s32.totalorder %s305_s17, %s2719_s28  ;;  %p2727_p4 = scmp.lt.s32.totalorder %s305_s17, %s305_s17 }
  0x91   : > { %p2728_p10 = scmp.lt.s32.totalorder %s2726_s24, %s2719_s28 }
  0x92   : > { %p2722_p7 = pnand %p2720_p5, %p3022_p8 }
  0x93   : > { %p2729_p11 = por %p2728_p10, %p2727_p4 }
  0x94   : > { %p2723_p9 = pneg %p2722_p7 }
  0x96   : > { %p2730_p12 = pnand %p2729_p11, %p2723_p9 }
  0x98   : > { %2733 = shalt.err (!%p2730_p12)
}
  0x99   : > { %2305 = dma.hbm_to_vmem [thread:$0]  (!%p3006_p6), %s3834_s4, 16, %s305_s17, [#allocation11]  }
  0x9a   : > { %s2734_s18 = scalar_lea.hbm %s3836_s6, 16 }
  0x9b   : > { %p2735_p13 = scmp.ne.s32.totalorder %s3836_s6, %s2734_s18  ;;  %p2741_p3 = scmp.lt.u32.totalorder %s2734_s18, %s3836_s6 }
  0x9d   : > { %p2737_p0 = pnand %p2735_p13, %p3022_p8 }
  0x9f   : > { %p2738_p1 = pneg %p2737_p0 }
  0xa1   : > { %p2743_p2 = pnand %p2741_p3, %p2738_p1 }
  0xa3   : > { %2746 = shalt.err (!%p2743_p2)
}
  0xa4   : > { %s2747_s28 = scalar_lea.vmem %s327_s13, 16  ;;  %s2754_s17 = scalar_lea.vmem %s327_s13, 32 }
  0xa5   : > { %p2748_p5 = scmp.ne.s32.totalorder %s327_s13, %s2747_s28  ;;  %p2755_p4 = scmp.lt.s32.totalorder %s327_s13, %s327_s13 }
  0xa6   : > { %p2756_p10 = scmp.lt.s32.totalorder %s2754_s17, %s2747_s28 }
  0xa7   : > { %p2750_p7 = pnand %p2748_p5, %p3022_p8 }
  0xa8   : > { %p2757_p11 = por %p2756_p10, %p2755_p4 }
  0xa9   : > { %p2751_p9 = pneg %p2750_p7 }
  0xab   : > { %p2758_p12 = pnand %p2757_p11, %p2751_p9 }
  0xad   : > { %2761 = shalt.err (!%p2758_p12)
}
  0xae   : > { %2311 = dma.hbm_to_vmem [thread:$0]  (!%p3006_p6), %s3836_s6, 16, %s327_s13, [#allocation14]  }
  0xaf   : > { %s2913_s29 = smov [#allocation18]   ;;  %s2762_s22 = scalar_lea.hbm %s3838_s8, 2048 }
  0xb0   : > { %s347_s1 = sshll.u32 %s2913_s29, 4  ;;  %p2763_p13 = scmp.ne.s32.totalorder %s3838_s8, %s2762_s22  ;;  %s348_s1 = int_to_ptr.vmem [resolvable:$true] %s347_s1 }
  0xb1   : > { %p2769_p3 = scmp.lt.u32.totalorder %s2762_s22, %s3838_s8 }
  0xb2   : > { %p2765_p0 = pnand %p2763_p13, %p3022_p8 }
  0xb4   : > { %p2766_p1 = pneg %p2765_p0 }
  0xb6   : > { %p2771_p2 = pnand %p2769_p3, %p2766_p1 }
  0xb8   : > { %2774 = shalt.err (!%p2771_p2)
}
  0xb9   : > { %s2775_s13 = scalar_lea.vmem %s348_s1, 2048  ;;  %p2783_p4 = scmp.lt.s32.totalorder %s348_s1, %s348_s1 }
  0xba   : > { %p2776_p5 = scmp.ne.s32.totalorder %s348_s1, %s2775_s13  ;;  %p2784_p10 = scmp.lt.s32.totalorder %s2775_s13, %s2775_s13 }
  0xbc   : > { %p2778_p7 = pnand %p2776_p5, %p3022_p8  ;;  %p2785_p11 = por %p2784_p10, %p2783_p4 }
  0xbe   : > { %p2779_p9 = pneg %p2778_p7 }
  0xc0   : > { %p2786_p12 = pnand %p2785_p11, %p2779_p9 }
  0xc2   : > { %2789 = shalt.err (!%p2786_p12)
}
  0xc3   : > { %2317 = dma.hbm_to_vmem [thread:$0]  (!%p3006_p6), %s3838_s8, 2048, %s348_s1, [#allocation17], %s3853_s25, %s3853_s25, %s3845_s20  }
  0xc4   : > { %s1924_s19 = sadd.s32 4294967294, %s2902_s12   ;;  %s3192_s27 = sadd.s32 1, %s2902_s12  }
  0xc5   : > { %s33_s26 = ssub.s32 %s2902_s12, %s3192_s27  ;;  %s36_s29 = sadd.s32 1, %s2898_s11 }
  0xc6   : > { %p34_p8 = scmp.eq.s32.totalorder %s33_s26, 0  ;;  %p43_p13 = scmp.ne.s32.totalorder %s2898_s11, %s2894_s10 }
  0xc7   : > { %p44_p0 = scmp.eq.s32.totalorder %s2902_s12, 0  ;;  %p49_p1 = scmp.ne.s32.totalorder %s2894_s10, %s2890_s30 }
  0xc8   : > { %s3203_s14 = scalar_select %p34_p8, %s2898_s11, %s36_s29  }
  0xc9   : > { %p3205_p3 = por %p44_p0, %p43_p13  ;;  %p3855_p2 = scmp.eq.s32.totalorder %s2990_s15, 0 }
  0xca   : > { %p241_p5 = scmp.eq.s32.totalorder %s2990_s15, 1  ;;  %p247_p7 = scmp.eq.s32.totalorder %s1924_s19, 1 }
  0xcb   : > { %p3211_p6 = por %p3855_p2, %p49_p1  ;;  %p2334_p9 = scmp.lt.s32.totalorder %s2902_s12, 2 }
  0xcc   : > { %s361_s22 = sand.u32 1, %s2898_s11   ;;  %p3218_p4 = por %p241_p5, %p43_p13 }
  0xcd   : > { %p3222_p10 = por %p247_p7, %p49_p1  ;;  %s1935_s23 = sshll.u32 %s361_s22, 6 }
  0xce   : > { %s3857_s9 = scalar_select %p3218_p4, 1, 0 }
  0xcf   : > { %s3858_s21 = scalar_select %p3222_p10, 1, 0 }
  0xd0   : > { %s1975_s28 = sshll.u32 %s2902_s12, 10  ;;  %s365_s19 = scalar_lea.vmem [#allocation4], %s1935_s23 }
  0xd1   : > { %s3230_s24 = scalar_lea.hbm %s3830_s0, %s1975_s28  ;;  %s372_s26 = sshll.u32 %s365_s19, 4  ;;  %s3232_s26 = int_to_ptr.vmem [resolvable:$true] %s372_s26 }
  0xd2   : > { %p3236_p11 = pnand %p2334_p9, %p3205_p3  ;;  %s3240_s20 = scalar_lea.sflag [#allocation5], %s361_s22 }
  0xd3   : > { %s2790_s13 = scalar_lea.hbm %s3230_s24, 1024  ;;  %s2795_s18 = scalar_lea.hbm %s3830_s0, 2048 }
  0xd4   : > { %p2791_p12 = scmp.ne.s32.totalorder %s3230_s24, %s2790_s13  ;;  %p2792_p8 = pneg %p3236_p11 }
  0xd5   : > { %p2796_p1 = scmp.lt.u32.totalorder %s3230_s24, %s3830_s0  ;;  %p2797_p3 = scmp.lt.u32.totalorder %s2795_s18, %s2790_s13 }
  0xd6   : > { %p2793_p13 = pnand %p2792_p8, %p2791_p12  ;;  %p2799_p5 = scmp.lt.u32.totalorder %s2790_s13, %s3230_s24 }
  0xd7   : > { %p2798_p2 = por %p2797_p3, %p2796_p1 }
  0xd8   : > { %p2794_p0 = pneg %p2793_p13 }
  0xd9   : > { %p2800_p7 = por %p2799_p5, %p2798_p2 }
  0xdb   : > { %p2801_p9 = pnand %p2800_p7, %p2794_p0 }
  0xdd   : > { %2804 = shalt.err (!%p2801_p9)
}
  0xde   : > { %s2805_s22 = scalar_lea.vmem %s3232_s26, 1024  ;;  %s2914_s23 = smov [#allocation4]  }
  0xdf   : > { %p2806_p12 = scmp.ne.s32.totalorder %s3232_s26, %s2805_s22  ;;  %s2810_s28 = sshll.u32 %s2914_s23, 4  ;;  %s2811_s28 = int_to_ptr.vmem [resolvable:$false] %s2810_s28 }
  0xe0   : > { %s2812_s17 = scalar_lea.vmem %s2811_s28, 2048  ;;  %p2813_p4 = scmp.lt.s32.totalorder %s3232_s26, %s2811_s28 }
  0xe1   : > { %p2808_p13 = pnand %p2806_p12, %p2792_p8  ;;  %p2814_p1 = scmp.lt.s32.totalorder %s2812_s17, %s2805_s22 }
  0xe3   : > { %p2809_p10 = pneg %p2808_p13  ;;  %p2815_p3 = por %p2814_p1, %p2813_p4 }
  0xe5   : > { %p2816_p2 = pnand %p2815_p3, %p2809_p10 }
  0xe7   : > { %2819 = shalt.err (!%p2816_p2)
}
  0xe8   : > { %s3860_s13 = smov 8   ;;  %p3861_p8 = scmp.ne.s32.totalorder %s3849_s16, 0 }
  0xe9   : > { %2321 = dma.hbm_to_vmem [thread:$0]  (!%p3236_p11), %s3230_s24, 1024, %s3232_s26, %s3240_s20, %s3853_s25, %s3853_s25, %s3860_s13  }
  0xea   : > { %384 = sbr.rel (%p3861_p8) target bundleno = 1114 (0x45a), region = 56  ;;  %s3274_s18 = sand.u32 (!%p3861_p8), 1, %s2894_s10  }
  0xeb   : > { %s1939_s19 = sshll.u32 (!%p3861_p8), %s3274_s18, 6  ;;  %s387_s22 = scalar_lea.sflag (!%p3861_p8), [#allocation5], %s3274_s18 }
  0xec   : > { %s3280_s29 = scalar_lea.vmem (!%p3861_p8), [#allocation4], %s1939_s19 }
  0xf1   : > { %2865 = dma.done.wait (%p3211_p6), %s387_s22, 1024  }
  0xf2   : > { %2867 = vsyncadd (%p3211_p6), %s387_s22, 4294966272  ;;  %p3862_p4 = scmp.eq.s32.totalorder %s2990_s15, 0 }
  0xf4   : > { %2869 = dma.done.wait (%p3862_p4), [#allocation8], 1024   ;;  %p3863_p10 = pmov %p3862_p4 }
  0xf5   : > { %p3864_p11 = pmov %p3862_p4 }
  0xf6   : > { %2871 = vsyncadd (%p3863_p10), [#allocation8], 4294966272 }
  0xf7   : > { %2873 = dma.done.wait (%p3864_p11), [#allocation11], 32   ;;  %p3865_p0 = pmov %p3862_p4 }
  0xf9   : > { %2875 = vsyncadd (%p3865_p0), [#allocation11], 4294967264  ;;  %p3866_p5 = pmov %p3865_p0 }
  0xfa   : > { %p3867_p7 = pmov %p3865_p0 }
  0xfb   : > { %2877 = dma.done.wait (%p3866_p5), [#allocation14], 32  }
  0xfc   : > { %2879 = vsyncadd (%p3867_p7), [#allocation14], 4294967264  ;;  %p3868_p6 = pmov %p3865_p0 }
  0xfd   : > { %p3869_p9 = pmov %p3865_p0 }
  0xfe   : > { %2881 = dma.done.wait (%p3868_p6), [#allocation17], 2064  }
  0xff   : > { %2883 = vsyncadd (%p3869_p9), [#allocation17], 4294965232  ;;  %v2915_v0 = vmov 0.0   ;;  %vm516_vm0 = vcmask 261120   ;;  %v505_v1 = vld [vmem:[#allocation7] sm:$0xff]  ;;  %v506_v2 = vld [vmem:[#allocation7 + $0x8] sm:$0xff] }
 0x100   : > { %461 = vst [vmem:[#allocation2 + $0x20] sm:$0xff] %v2915_v0  ;;  %462 = vst [vmem:[#allocation2 + $0x28] sm:$0x3] %v2915_v0  ;;  %v507_v3 = vld [vmem:[#allocation7 + $0x10] sm:$0xff]  ;;  %v2177_v4 = vpack.c.bf16 %v506_v2, %v505_v1  ;;  %v508_v5 = vld [vmem:[#allocation7 + $0x18] sm:$0xff]  ;;  %s3767_s16 = scalar_lea.vmem [#allocation19], %s1939_s19 }
 0x101   : > { %457 = vst [vmem:[#allocation2] sm:$0xff] %v2915_v0  ;;  %458 = vst [vmem:[#allocation2 + $0x8] sm:$0x3] %v2915_v0  ;;  %v497_v6 = vld [vmem:[%s3280_s29] sm:$0xff]  ;;  %v2181_v7 = vpack.c.bf16 %v508_v5, %v507_v3  ;;  %v647_v9 = vld [vmem:[#allocation9 + $0x8] sm:$0xff]  ;;  %s1976_s20 = sshll.u32 %s2990_s15, 10 }
 0x102   : > { %459 = vst [vmem:[#allocation2 + $0x10] sm:$0xff] %v2915_v0  ;;  %460 = vst [vmem:[#allocation2 + $0x18] sm:$0x3] %v2915_v0  ;;  %2057 = vmatprep.mubr.msk.f32.mxu0 %vm516_vm0, %v497_v6  ;;  %2077 = vmatprep.mubr.msk.f32.mxu1 %vm516_vm0, %v497_v6  ;;  %v646_v8 = vld [vmem:[#allocation9] sm:$0xff]  ;;  %v648_v10 = vld [vmem:[#allocation9 + $0x10] sm:$0xff]  ;;  %s1775_s25 = sshll.u32 %s3767_s16, 4  ;;  %s3784_s25 = int_to_ptr.vmem [resolvable:$true] %s1775_s25 }
 0x103   : > { %463 = vst [vmem:[#allocation2 + $0x30] sm:$0xff] %v2915_v0  ;;  %464 = vst [vmem:[#allocation2 + $0x38] sm:$0x3] %v2915_v0  ;;  %2178 = vmatprep.subr.bf16.mxu0 %v2177_v4  ;;  %v2185_v11 = vpack.c.bf16 %v647_v9, %v646_v8  ;;  %v649_v12 = vld [vmem:[#allocation9 + $0x18] sm:$0xff]  ;;  %v498_v14 = vld [vmem:[%s3280_s29 + $0x8] sm:$0xff]  ;;  %s3870_s26 = sld [smem:[#allocation27_spill]] }
 0x104   : > { %465 = vst [vmem:[#allocation2 + $0x40] sm:$0xff] %v2915_v0  ;;  %466 = vst [vmem:[#allocation2 + $0x48] sm:$0x3] %v2915_v0  ;;  %2180 = vmatpush3.bf16.msra.mxu0 %v2177_v4  ;;  %v2189_v13 = vpack.c.bf16 %v649_v12, %v648_v10  ;;  %v499_v15 = vld [vmem:[%s3280_s29 + $0x10] sm:$0xff]  ;;  %v500_v16 = vld [vmem:[%s3280_s29 + $0x18] sm:$0xff]  ;;  %s1762_s28 = scalar_lea.sflag [#allocation6], %s3274_s18 }
 0x105   : > { %467 = vst [vmem:[#allocation2 + $0x50] sm:$0xff] %v2915_v0  ;;  %468 = vst [vmem:[#allocation2 + $0x58] sm:$0x3] %v2915_v0  ;;  %2182 = vmatprep.subr.bf16.mxu0 %v2181_v7  ;;  %2186 = vmatprep.subr.bf16.mxu1 %v2185_v11  ;;  %v501_v17 = vld [vmem:[%s3280_s29 + $0x20] sm:$0xff]  ;;  %v502_v18 = vld [vmem:[%s3280_s29 + $0x28] sm:$0xff]  ;;  %s2820_s17 = scalar_lea.vmem %s3784_s25, 1024 }
 0x106   : > { %469 = vst [vmem:[#allocation2 + $0x60] sm:$0xff] %v2915_v0  ;;  %470 = vst [vmem:[#allocation2 + $0x68] sm:$0x3] %v2915_v0  ;;  %2188 = vmatpush3.bf16.msra.mxu1 %v2185_v11  ;;  %v503_v19 = vld [vmem:[%s3280_s29 + $0x30] sm:$0xff]  ;;  %v504_v20 = vld [vmem:[%s3280_s29 + $0x38] sm:$0xff]  ;;  %p2821_p12 = scmp.ne.s32.totalorder %s3784_s25, %s2820_s17  ;;  %p3871_p13 = scmp.ne.s32.totalorder %s3857_s9, 0 }
 0x107   : > { %471 = vst [vmem:[#allocation2 + $0x70] sm:$0xff] %v2915_v0  ;;  %472 = vst [vmem:[#allocation2 + $0x78] sm:$0x3] %v2915_v0  ;;  %2190 = vmatprep.subr.bf16.mxu1 %v2189_v13  ;;  %v1465_v21 = vld [vmem:[#allocation18] sm:$0xff]  ;;  %v1466_v22 = vld [vmem:[#allocation18 + $0x8] sm:$0xff]  ;;  %s2916_s15 = smov [#allocation19]  }
 0x108   : > { %473 = vst [vmem:[#allocation2 + $0x80] sm:$0xff] %v2915_v0  ;;  %474 = vst [vmem:[#allocation2 + $0x88] sm:$0x3] %v2915_v0  ;;  %2184 = vmatpush3.bf16.msra.mxu0 %v2181_v7  ;;  %v1467_v23 = vld [vmem:[#allocation18 + $0x10] sm:$0xff]  ;;  %v2193_v24 = vpack.c.bf16 %v1466_v22, %v1465_v21  ;;  %v1468_v25 = vld [vmem:[#allocation18 + $0x18] sm:$0xff]  ;;  %p2822_p1 = pnand %p2821_p12, %p3871_p13  ;;  %s2824_s13 = sshll.u32 %s2916_s15, 4  ;;  %s2825_s13 = int_to_ptr.vmem [resolvable:$false] %s2824_s13 }
 0x109   : > { %475 = vst [vmem:[#allocation2 + $0x90] sm:$0xff] %v2915_v0  ;;  %476 = vst [vmem:[#allocation2 + $0x98] sm:$0x3] %v2915_v0  ;;  %v2197_v26 = vpack.c.bf16 %v1468_v25, %v1467_v23  ;;  %v1469_v27 = vld [vmem:[#allocation18 + $0x20] sm:$0xff]  ;;  %v1470_v28 = vld [vmem:[#allocation18 + $0x28] sm:$0xff]  ;;  %s3782_s23 = scalar_lea.hbm %s3870_s26, %s1976_s20  ;;  %s2826_s19 = scalar_lea.vmem %s2825_s13, 2048 }
 0x10a   : > { %477 = vst [vmem:[#allocation3] sm:$0xff] %v2915_v0  ;;  %478 = vst [vmem:[#allocation3 + $0x8] sm:$0x3] %v2915_v0  ;;  %2192 = vmatpush3.bf16.msra.mxu1 %v2189_v13  ;;  %2194 = vmatprep.subr.bf16.mxu0 %v2193_v24  ;;  %v2201_v29 = vpack.c.bf16 %v1470_v28, %v1469_v27  ;;  %v1471_v30 = vld [vmem:[#allocation18 + $0x30] sm:$0xff]  ;;  %v1472_v31 = vld [vmem:[#allocation18 + $0x38] sm:$0xff]  ;;  %p2823_p3 = pneg %p2822_p1  ;;  %p2827_p2 = scmp.lt.s32.totalorder %s3784_s25, %s2825_s13 }
 0x10b   : > { %479 = vst [vmem:[#allocation3 + $0x10] sm:$0xff] %v2915_v0  ;;  %480 = vst [vmem:[#allocation3 + $0x18] sm:$0x3] %v2915_v0  ;;  %2058 = vmatmul.mubr.msk.f32.vlgmr.msra.gmra.mrb[0].mxu0 %vm516_vm0, %v498_v14  ;;  %2226 = vmatprep.subr.bf16.mxu1 %v2193_v24  ;;  %v2205_v32 = vpack.c.bf16 %v1472_v31, %v1471_v30  ;;  %v1473_v33 = vld [vmem:[#allocation18 + $0x40] sm:$0xff]  ;;  %v1474_v34 = vld [vmem:[#allocation18 + $0x48] sm:$0xff]  ;;  %p2828_p8 = scmp.lt.s32.totalorder %s2826_s19, %s2820_s17 }
 0x10c   : > { %481 = vst [vmem:[#allocation3 + $0x20] sm:$0xff] %v2915_v0  ;;  %482 = vst [vmem:[#allocation3 + $0x28] sm:$0x3] %v2915_v0  ;;  %2060 = vmatprep.mubr.msk.f32.mxu0 %vm516_vm0, %v499_v15  ;;  %2196 = vmatpush3.bf16.msra.mxu0 %v2193_v24  ;;  %v2209_v35 = vpack.c.bf16 %v1474_v34, %v1473_v33  ;;  %v1475_v36 = vld [vmem:[#allocation18 + $0x50] sm:$0xff]  ;;  %v1476_v37 = vld [vmem:[#allocation18 + $0x58] sm:$0xff] }
 0x10d   : > { %483 = vst [vmem:[#allocation3 + $0x30] sm:$0xff] %v2915_v0  ;;  %484 = vst [vmem:[#allocation3 + $0x38] sm:$0x3] %v2915_v0  ;;  %2078 = vmatmul.mubr.msk.f32.vlgmr.msra.gmra.mrb[0].mxu1 %vm516_vm0, %v498_v14  ;;  %2198 = vmatprep.subr.bf16.mxu0 %v2197_v26  ;;  %v2213_v38 = vpack.c.bf16 %v1476_v37, %v1475_v36  ;;  %v1477_v39 = vld [vmem:[#allocation18 + $0x60] sm:$0xff]  ;;  %v1478_v40 = vld [vmem:[#allocation18 + $0x68] sm:$0xff]  ;;  %p2829_p4 = por %p2828_p8, %p2827_p2 }
 0x10e   : > { %485 = vst [vmem:[#allocation3 + $0x40] sm:$0xff] %v2915_v0  ;;  %486 = vst [vmem:[#allocation3 + $0x48] sm:$0x3] %v2915_v0  ;;  %2080 = vmatprep.mubr.msk.f32.mxu1 %vm516_vm0, %v499_v15  ;;  %2228 = vmatpush3.bf16.msra.mxu1 %v2193_v24  ;;  %v2217_v41 = vpack.c.bf16 %v1478_v40, %v1477_v39  ;;  %v1479_v42 = vld [vmem:[#allocation18 + $0x70] sm:$0xff]  ;;  %v1480_v43 = vld [vmem:[#allocation18 + $0x78] sm:$0xff] }
 0x10f   : > { %487 = vst [vmem:[#allocation3 + $0x50] sm:$0xff] %v2915_v0  ;;  %488 = vst [vmem:[#allocation3 + $0x58] sm:$0x3] %v2915_v0  ;;  %2061 = vmatmul.mubr.msk.f32.gmra.mrb[2].mxu0 %vm516_vm0, %v500_v16  ;;  %2230 = vmatprep.subr.bf16.mxu1 %v2197_v26  ;;  %v2221_v44 = vpack.c.bf16 %v1480_v43, %v1479_v42  ;;  %v1949_v45 = vld [vmem:[#allocation10] ss:$0 sm:$0xff]  ;;  %v3328_v49 = vld [vmem:[#allocation2 + $0x1] sm:$0xff]  ;;  %p2830_p10 = pnand %p2829_p4, %p2823_p3 }
 0x110   : > { %489 = vst [vmem:[#allocation3 + $0x60] sm:$0xff] %v2915_v0  ;;  %490 = vst [vmem:[#allocation3 + $0x68] sm:$0x3] %v2915_v0  ;;  %2063 = vmatprep.mubr.msk.f32.mxu0 %vm516_vm0, %v501_v17  ;;  %2200 = vmatpush3.bf16.msra.mxu0 %v2197_v26  ;;  %v3332_v51 = vld [vmem:[#allocation12] ss:$0 sm:$0xff]  ;;  %v810_v54 = vmax.f32 %v3328_v49, 0.0 }
 0x111   : > { %491 = vst [vmem:[#allocation3 + $0x70] sm:$0xff] %v2915_v0  ;;  %492 = vst [vmem:[#allocation3 + $0x78] sm:$0x3] %v2915_v0  ;;  %2081 = vmatmul.mubr.msk.f32.gmra.mrb[2].mxu1 %vm516_vm0, %v500_v16  ;;  %2202 = vmatprep.subr.bf16.mxu0 %v2201_v29  ;;  %v3342_v59 = vld [vmem:[#allocation2 + $0x2] sm:$0xff] }
 0x112   : > { %493 = vst [vmem:[#allocation3 + $0x80] sm:$0xff] %v2915_v0  ;;  %494 = vst [vmem:[#allocation3 + $0x88] sm:$0x3] %v2915_v0  ;;  %2083 = vmatprep.mubr.msk.f32.mxu1 %vm516_vm0, %v501_v17  ;;  %2232 = vmatpush3.bf16.msra.mxu1 %v2197_v26 }
 0x113   : > { %495 = vst [vmem:[#allocation3 + $0x90] sm:$0xff] %v2915_v0  ;;  %496 = vst [vmem:[#allocation3 + $0x98] sm:$0x3] %v2915_v0  ;;  %2064 = vmatmul.mubr.msk.f32.gmra.mrb[4].mxu0 %vm516_vm0, %v502_v18  ;;  %2234 = vmatprep.subr.bf16.mxu1 %v2201_v29  ;;  %v826_v0 = vmax.f32 %v810_v54, %v3342_v59 }
 0x114   : > { %2066 = vmatprep.mubr.msk.f32.mxu0 %vm516_vm0, %v503_v19  ;;  %2204 = vmatpush3.bf16.msra.mxu0 %v2201_v29 }
 0x115   : > { %2084 = vmatmul.mubr.msk.f32.gmra.mrb[4].mxu1 %vm516_vm0, %v502_v18  ;;  %2206 = vmatprep.subr.bf16.mxu0 %v2205_v32 }
 0x116   : > { %2086 = vmatprep.mubr.msk.f32.mxu1 %vm516_vm0, %v503_v19  ;;  %2236 = vmatpush3.bf16.msra.mxu1 %v2201_v29 }
 0x117   : > { %2067 = vmatmul.mubr.msk.f32.gmra.mrb[6].mxu0 %vm516_vm0, %v504_v20  ;;  %2238 = vmatprep.subr.bf16.mxu1 %v2205_v32 }
 0x118   : > { %2208 = vmatpush3.bf16.msra.mxu0 %v2205_v32 }
 0x119   : > { %2087 = vmatmul.mubr.msk.f32.gmra.mrb[6].mxu1 %vm516_vm0, %v504_v20  ;;  %2210 = vmatprep.subr.bf16.mxu0 %v2209_v35 }
 0x11a   : > { %2240 = vmatpush3.bf16.msra.mxu1 %v2205_v32 }
 0x11b   : > { %2242 = vmatprep.subr.bf16.mxu1 %v2209_v35 }
 0x11c   : > { %2212 = vmatpush3.bf16.msra.mxu0 %v2209_v35 }
 0x11d   : > { %2214 = vmatprep.subr.bf16.mxu0 %v2213_v38 }
 0x11e   : > { %2244 = vmatpush3.bf16.msra.mxu1 %v2209_v35 }
 0x11f   : > { %2246 = vmatprep.subr.bf16.mxu1 %v2213_v38 }
 0x120   : > { %2216 = vmatpush3.bf16.msra.mxu0 %v2213_v38 }
 0x121   : > { %2218 = vmatprep.subr.bf16.mxu0 %v2217_v41 }
 0x122   : > { %2248 = vmatpush3.bf16.msra.mxu1 %v2213_v38 }
 0x123   : > { %2250 = vmatprep.subr.bf16.mxu1 %v2217_v41 }
 0x124   : > { %2220 = vmatpush3.bf16.msra.mxu0 %v2217_v41 }
 0x125   : > { %2222 = vmatprep.subr.bf16.mxu0 %v2221_v44 }
 0x126   : > { %2252 = vmatpush3.bf16.msra.mxu1 %v2217_v41 }
 0x127   : > { %2254 = vmatprep.subr.bf16.mxu1 %v2221_v44 }
 0x128   : > { %2224 = vmatpush3.bf16.msra.mxu0 %v2221_v44 }
 0x12a   : > { %2256 = vmatpush3.bf16.msra.mxu1 %v2221_v44 }
 0x1de   : > { %v2059_v46 = vpop.f32.mrb[0].mxu0 }
 0x1df   : > { %v3326_v47 = vadd.f32 %v2059_v46, %v1949_v45  ;;  %v607_v48 = vpop.f32.mrb[1].mxu0 }
 0x1e0   : > { %v3330_v50 = vadd.f32 %v1949_v45, %v607_v48  ;;  %v2079_v53 = vpop.f32.mrb[0].mxu1 }
 0x1e1   : > { %767 = vst [vmem:[#allocation2 + $0x21] sm:$0xff] %v3326_v47  ;;  %v3340_v57 = vadd.f32 %v2079_v53, %v3332_v51  ;;  %v723_v58 = vpop.f32.mrb[1].mxu1 }
 0x1e2   : > { %763 = vst [vmem:[#allocation2 + $0x11] sm:$0xff] %v3330_v50  ;;  %v2062_v52 = vpop.f32.mrb[2].mxu0  ;;  %v3347_v61 = vadd.f32 %v3332_v51, %v723_v58 }
 0x1e3   : > { %v3337_v55 = vadd.f32 %v2062_v52, %v1949_v45  ;;  %v617_v56 = vpop.f32.mrb[3].mxu0  ;;  %769 = vst [vmem:[#allocation3 + $0x21] sm:$0xff] %v3340_v57 }
 0x1e4   : > { %v3344_v60 = vadd.f32 %v1949_v45, %v617_v56  ;;  %765 = vst [vmem:[#allocation3 + $0x11] sm:$0xff] %v3347_v61  ;;  %v2082_v63 = vpop.f32.mrb[2].mxu1 }
 0x1e5   : > { %775 = vst [vmem:[#allocation2 + $0x41] sm:$0xff] %v3337_v55  ;;  %v3357_v3 = vadd.f32 %v2082_v63, %v3332_v51  ;;  %v733_v4 = vpop.f32.mrb[3].mxu1 }
 0x1e6   : > { %771 = vst [vmem:[#allocation2 + $0x31] sm:$0xff] %v3344_v60  ;;  %v2065_v62 = vpop.f32.mrb[4].mxu0  ;;  %v3364_v7 = vadd.f32 %v3332_v51, %v733_v4 }
 0x1e7   : > { %v3354_v1 = vadd.f32 %v2065_v62, %v1949_v45  ;;  %v627_v2 = vpop.f32.mrb[5].mxu0  ;;  %777 = vst [vmem:[#allocation3 + $0x41] sm:$0xff] %v3357_v3 }
 0x1e8   : > { %v3359_v5 = vld [vmem:[#allocation2 + $0x20] sm:$0xff]  ;;  %v3361_v6 = vadd.f32 %v1949_v45, %v627_v2  ;;  %773 = vst [vmem:[#allocation3 + $0x31] sm:$0xff] %v3364_v7  ;;  %v2085_v12 = vpop.f32.mrb[4].mxu1 }
 0x1e9   : > { %v3366_v8 = vld [vmem:[#allocation2 + $0x10] sm:$0xff]  ;;  %783 = vst [vmem:[#allocation2 + $0x61] sm:$0xff] %v3354_v1  ;;  %v812_v9 = vmax.f32 %v3359_v5, %v3326_v47  ;;  %v3377_v14 = vld [vmem:[#allocation2 + $0x22] sm:$0xff]  ;;  %v3382_v18 = vadd.f32 %v2085_v12, %v3332_v51  ;;  %v743_v19 = vpop.f32.mrb[5].mxu1 }
 0x1ea   : > { %v811_v10 = vmax.f32 %v3366_v8, %v3330_v50  ;;  %779 = vst [vmem:[#allocation2 + $0x51] sm:$0xff] %v3361_v6  ;;  %v2068_v11 = vpop.f32.mrb[6].mxu0  ;;  %v842_v13 = vmax.f32 %v826_v0, %v3366_v8  ;;  %v3379_v15 = vld [vmem:[#allocation2 + $0x12] sm:$0xff]  ;;  %v3389_v23 = vadd.f32 %v3332_v51, %v743_v19 }
 0x1eb   : > { %v643_v16 = vadd.f32 %v2068_v11, %v1949_v45  ;;  %v637_v17 = vpop.f32.mrb[7].mxu0  ;;  %v828_v20 = vmax.f32 %v812_v9, %v3377_v14  ;;  %785 = vst [vmem:[#allocation3 + $0x61] sm:$0xff] %v3382_v18 }
 0x1ec   : > { %v827_v21 = vmax.f32 %v811_v10, %v3379_v15  ;;  %v3386_v22 = vadd.f32 %v1949_v45, %v637_v17  ;;  %v858_v24 = vmax.f32 %v842_v13, %v3330_v50  ;;  %v3392_v25 = vld [vmem:[#allocation2 + $0x40] sm:$0xff]  ;;  %781 = vst [vmem:[#allocation3 + $0x51] sm:$0xff] %v3389_v23  ;;  %v2088_v28 = vpop.f32.mrb[6].mxu1 }
 0x1ed   : > { %791 = vst [vmem:[#allocation2 + $0x81] sm:$0xff] %v643_v16  ;;  %v3395_v26 = vld [vmem:[#allocation2 + $0x30] sm:$0xff]  ;;  %v814_v27 = vmax.f32 %v3392_v25, %v3337_v55  ;;  %v3404_v32 = vld [vmem:[#allocation2 + $0x42] sm:$0xff]  ;;  %v759_v34 = vadd.f32 %v2088_v28, %v3332_v51  ;;  %v753_v35 = vpop.f32.mrb[7].mxu1 }
 0x1ee   : > { %787 = vst [vmem:[#allocation2 + $0x71] sm:$0xff] %v3386_v22  ;;  %v874_v29 = vmax.f32 %v858_v24, %v3379_v15  ;;  %v843_v30 = vmax.f32 %v827_v21, %v3359_v5  ;;  %v844_v31 = vmax.f32 %v828_v20, %v3395_v26  ;;  %v813_v33 = vmax.f32 %v3395_v26, %v3344_v60  ;;  %v3413_v40 = vld [vmem:[#allocation2 + $0x32] sm:$0xff] }
 0x1ef   : > { %v830_v36 = vmax.f32 %v814_v27, %v3404_v32  ;;  %v754_v37 = vadd.f32 %v3332_v51, %v753_v35  ;;  %793 = vst [vmem:[#allocation3 + $0x81] sm:$0xff] %v759_v34 }
 0x1f0   : > { %v890_v38 = vmax.f32 %v874_v29, %v3359_v5  ;;  %v859_v39 = vmax.f32 %v843_v30, %v3326_v47  ;;  %v860_v41 = vmax.f32 %v844_v31, %v3344_v60  ;;  %v829_v42 = vmax.f32 %v813_v33, %v3413_v40  ;;  %v3434_v9 = vld [vmem:[#allocation2 + $0x60] sm:$0xff] }
 0x1f1   : > { %v3417_v43 = vld [vmem:[#allocation2 + $0x50] sm:$0xff]  ;;  %789 = vst [vmem:[#allocation3 + $0x71] sm:$0xff] %v754_v37  ;;  %v3436_v10 = vld [vmem:[#allocation2 + $0x61] sm:$0xff] }
 0x1f2   : > { %v906_v44 = vmax.f32 %v890_v38, %v3326_v47  ;;  %v875_v45 = vmax.f32 %v859_v39, %v3377_v14  ;;  %v876_v46 = vmax.f32 %v860_v41, %v3413_v40  ;;  %v846_v48 = vmax.f32 %v830_v36, %v3417_v43  ;;  %v3442_v17 = vld [vmem:[#allocation2 + $0x52] sm:$0xff] }
 0x1f3   : > { %v845_v51 = vmax.f32 %v829_v42, %v3392_v25  ;;  %v815_v53 = vmax.f32 %v3417_v43, %v3361_v6  ;;  %v816_v28 = vmax.f32 %v3434_v9, %v3436_v10 }
 0x1f4   : > { %v922_v52 = vmax.f32 %v906_v44, %v3377_v14  ;;  %v891_v54 = vmax.f32 %v875_v45, %v3395_v26  ;;  %v892_v56 = vmax.f32 %v876_v46, %v3392_v25  ;;  %v862_v62 = vmax.f32 %v846_v48, %v3361_v6 }
 0x1f5   : > { %v861_v58 = vmax.f32 %v845_v51, %v3337_v55  ;;  %v3447_v27 = vmax.f32 %v815_v53, %v3442_v17 }
 0x1f6   : > { %v930_v63 = vsub.f32 0.0, %v922_v52  ;;  %v986_v0 = vsub.f32 %v3328_v49, %v922_v52  ;;  %v1042_v2 = vsub.f32 %v3342_v59, %v922_v52  ;;  %v1098_v4 = vsub.f32 %v3366_v8, %v922_v52 }
 0x1f7   : > { %v1154_v11 = vsub.f32 %v3330_v50, %v922_v52  ;;  %v1210_v12 = vsub.f32 %v3379_v15, %v922_v52  ;;  %v1266_v13 = vsub.f32 %v3359_v5, %v922_v52  ;;  %v1322_v16 = vsub.f32 %v3326_v47, %v922_v52 }
 0x1f8   : > { %v938_v19 = vmul.f32 1.442695, %v930_v63  ;;  %v994_v49 = vmul.f32 1.442695, %v986_v0  ;;  %v1050_v20 = vmul.f32 1.442695, %v1042_v2  ;;  %v1378_v59 = vsub.f32 %v3377_v14, %v922_v52 }
 0x1f9   : > { %v1106_v21 = vmul.f32 1.442695, %v1098_v4  ;;  %v907_v24 = vmax.f32 %v891_v54, %v3344_v60  ;;  %v1162_v29 = vmul.f32 1.442695, %v1154_v11  ;;  %v1218_v30 = vmul.f32 1.442695, %v1210_v12 }
 0x1fa   : > { %2389 = vpow2.f32 %v938_v19  ;;  %v1274_v31 = vmul.f32 1.442695, %v1266_v13  ;;  %v1330_v33 = vmul.f32 1.442695, %v1322_v16  ;;  %v1386_v34 = vmul.f32 1.442695, %v1378_v59 }
 0x1fb   : > { %2391 = vpow2.f32 %v994_v49  ;;  %v923_v35 = vmax.f32 %v907_v24, %v3413_v40  ;;  %v908_v36 = vmax.f32 %v892_v56, %v3337_v55  ;;  %v877_v37 = vmax.f32 %v861_v58, %v3404_v32  ;;  %v1018_v58 = vld [vmem:[#allocation3 + $0x1] sm:$0xff] }
 0x1fc   : > { %2393 = vpow2.f32 %v1050_v20  ;;  %v878_v38 = vmax.f32 %v862_v62, %v3442_v17  ;;  %v1074_v13 = vld [vmem:[#allocation3 + $0x2] sm:$0xff] }
 0x1fd   : > { %2395 = vpow2.f32 %v1106_v21  ;;  %v931_v39 = vsub.f32 %v3366_v8, %v923_v35  ;;  %v987_v41 = vsub.f32 %v3330_v50, %v923_v35  ;;  %v1043_v42 = vsub.f32 %v3379_v15, %v923_v35  ;;  %v1130_v21 = vld [vmem:[#allocation3 + $0x10] sm:$0xff] }
 0x1fe   : > { %2397 = vpow2.f32 %v1162_v29  ;;  %v1099_v44 = vsub.f32 %v3359_v5, %v923_v35  ;;  %v1155_v45 = vsub.f32 %v3326_v47, %v923_v35  ;;  %v1211_v46 = vsub.f32 %v3377_v14, %v923_v35 }
 0x1ff   : > { %2399 = vpow2.f32 %v1218_v30  ;;  %v940_v48 = vmul.f32 1.442695, %v931_v39  ;;  %v996_v51 = vmul.f32 1.442695, %v987_v41  ;;  %v1052_v52 = vmul.f32 1.442695, %v1043_v42 }
 0x200   : > { %2401 = vpow2.f32 %v1274_v31  ;;  %v1108_v53 = vmul.f32 1.442695, %v1099_v44  ;;  %v1164_v54 = vmul.f32 1.442695, %v1155_v45  ;;  %v1220_v56 = vmul.f32 1.442695, %v1211_v46 }
 0x201   : > { %2403 = vpow2.f32 %v1330_v33  ;;  %v1267_v50 = vsub.f32 %v3395_v26, %v923_v35  ;;  %v1323_v8 = vsub.f32 %v3344_v60, %v923_v35  ;;  %v1379_v15 = vsub.f32 %v3413_v40, %v923_v35  ;;  %v1242_v35 = vld [vmem:[#allocation3 + $0x12] sm:$0xff]  ;;  %v3483_v42 = vld [vmem:[#allocation3 + $0x20] sm:$0xff] }
 0x202   : > { %2405 = vpow2.f32 %v1386_v34  ;;  %v3465_v62 = vmax.f32 %v908_v36, %v3404_v32  ;;  %v3468_v63 = vmax.f32 %v877_v37, %v3417_v43  ;;  %v3471_v0 = vmax.f32 %v878_v38, %v3434_v9 }
 0x203   : > { %2407 = vpow2.f32 %v940_v48  ;;  %v1276_v2 = vmul.f32 1.442695, %v1267_v50  ;;  %v1332_v4 = vmul.f32 1.442695, %v1323_v8  ;;  %v1388_v11 = vmul.f32 1.442695, %v1379_v15 }
 0x204   : > { %v2390_v12 = vpop.eup %2389  ;;  %2409 = vpow2.f32 %v996_v51  ;;  %v932_v16 = vsub.f32 %v3359_v5, %v3465_v62  ;;  %v988_v19 = vsub.f32 %v3326_v47, %v3465_v62  ;;  %v1044_v49 = vsub.f32 %v3377_v14, %v3465_v62 }
 0x205   : > { %v2392_v20 = vpop.eup %2391  ;;  %v970_v59 = vmul.f32 0.0, %v2390_v12  ;;  %2411 = vpow2.f32 %v1052_v52  ;;  %v1100_v24 = vsub.f32 %v3395_v26, %v3465_v62  ;;  %v1156_v29 = vsub.f32 %v3344_v60, %v3465_v62 }
 0x206   : > { %v2394_v30 = vpop.eup %2393  ;;  %v1010_v31 = vadd.f32 %v2392_v20, %v2390_v12  ;;  %v1026_v33 = vmul.f32 %v2392_v20, %v1018_v58  ;;  %2413 = vpow2.f32 %v1108_v53  ;;  %v942_v5 = vmul.f32 1.442695, %v932_v16 }
 0x207   : > { %v2396_v34 = vpop.eup %2395  ;;  %v1082_v47 = vmul.f32 %v2394_v30, %v1074_v13  ;;  %2415 = vpow2.f32 %v1164_v54  ;;  %v998_v14 = vmul.f32 1.442695, %v988_v19  ;;  %v1054_v36 = vmul.f32 1.442695, %v1044_v49  ;;  %v3486_v54 = vld [vmem:[#allocation3 + $0x22] sm:$0xff] }
 0x208   : > { %v2398_v37 = vpop.eup %2397  ;;  %v1034_v38 = vadd.f32 %v1026_v33, %v970_v59  ;;  %v1066_v39 = vadd.f32 %v2394_v30, %v1010_v31  ;;  %v1138_v41 = vmul.f32 %v2396_v34, %v1130_v21  ;;  %2417 = vpow2.f32 %v1220_v56 }
 0x209   : > { %v2400_v44 = vpop.eup %2399  ;;  %v1194_v45 = vmul.f32 %v2398_v37, %v3347_v61  ;;  %2419 = vpow2.f32 %v1276_v2  ;;  %v1110_v46 = vmul.f32 1.442695, %v1100_v24  ;;  %v1166_v48 = vmul.f32 1.442695, %v1156_v29 }
 0x20a   : > { %v2402_v51 = vpop.eup %2401  ;;  %v1090_v52 = vadd.f32 %v1082_v47, %v1034_v38  ;;  %v1122_v53 = vadd.f32 %v2396_v34, %v1066_v39  ;;  %v1250_v50 = vmul.f32 %v2400_v44, %v1242_v35  ;;  %2421 = vpow2.f32 %v1332_v4 }
 0x20b   : > { %v2404_v8 = vpop.eup %2403  ;;  %v1306_v15 = vmul.f32 %v2402_v51, %v3483_v42  ;;  %2423 = vpow2.f32 %v1388_v11  ;;  %v1212_v56 = vsub.f32 %v3413_v40, %v3465_v62  ;;  %v1268_v58 = vsub.f32 %v3392_v25, %v3465_v62 }
 0x20c   : > { %v2406_v2 = vpop.eup %2405  ;;  %v1146_v12 = vadd.f32 %v1138_v41, %v1090_v52  ;;  %v1178_v13 = vadd.f32 %v2398_v37, %v1122_v53  ;;  %v1362_v16 = vmul.f32 %v2404_v8, %v3340_v57  ;;  %2425 = vpow2.f32 %v942_v5 }
 0x20d   : > { %v2408_v19 = vpop.eup %2407  ;;  %v1418_v49 = vmul.f32 %v2406_v2, %v3486_v54  ;;  %2427 = vpow2.f32 %v998_v14  ;;  %v1222_v4 = vmul.f32 1.442695, %v1212_v56  ;;  %v1278_v20 = vmul.f32 1.442695, %v1268_v58 }
 0x20e   : > { %v2410_v59 = vpop.eup %2409  ;;  %v1202_v11 = vadd.f32 %v1194_v45, %v1146_v12  ;;  %v1234_v24 = vadd.f32 %v2400_v44, %v1178_v13  ;;  %v971_v29 = vmul.f32 %v2408_v19, %v1130_v21  ;;  %2429 = vpow2.f32 %v1054_v36  ;;  %v3499_v21 = vld [vmem:[#allocation3 + $0x30] sm:$0xff] }
 0x20f   : > { %v2412_v30 = vpop.eup %2411  ;;  %v1011_v31 = vadd.f32 %v2410_v59, %v2408_v19  ;;  %v1027_v33 = vmul.f32 %v2410_v59, %v3347_v61  ;;  %2431 = vpow2.f32 %v1110_v46  ;;  %v1324_v34 = vsub.f32 %v3337_v55, %v3465_v62 }
 0x210   : > { %v2414_v5 = vpop.eup %2413  ;;  %v1258_v47 = vadd.f32 %v1250_v50, %v1202_v11  ;;  %v1290_v37 = vadd.f32 %v2402_v51, %v1234_v24  ;;  %v1083_v38 = vmul.f32 %v2412_v30, %v1242_v35  ;;  %2433 = vpow2.f32 %v1166_v48  ;;  %v3503_v48 = vld [vmem:[#allocation3 + $0x32] sm:$0xff] }
 0x211   : > { %v2416_v14 = vpop.eup %2415  ;;  %v1035_v39 = vadd.f32 %v1027_v33, %v971_v29  ;;  %v1067_v41 = vadd.f32 %v2412_v30, %v1011_v31  ;;  %v1139_v44 = vmul.f32 %v2414_v5, %v3483_v42  ;;  %2435 = vpow2.f32 %v1222_v4 }
 0x212   : > { %v2418_v36 = vpop.eup %2417  ;;  %v1314_v45 = vadd.f32 %v1306_v15, %v1258_v47  ;;  %v1346_v61 = vadd.f32 %v2404_v8, %v1290_v37  ;;  %v1195_v46 = vmul.f32 %v2416_v14, %v3340_v57  ;;  %2437 = vpow2.f32 %v1278_v20 }
 0x213   : > { %v2420_v52 = vpop.eup %2419  ;;  %v1091_v53 = vadd.f32 %v1083_v38, %v1035_v39  ;;  %v1123_v50 = vadd.f32 %v2414_v5, %v1067_v41  ;;  %v1251_v35 = vmul.f32 %v2418_v36, %v3486_v54  ;;  %v1334_v51 = vmul.f32 1.442695, %v1324_v34 }
 0x214   : > { %v2422_v56 = vpop.eup %2421  ;;  %v1370_v58 = vadd.f32 %v1362_v16, %v1314_v45  ;;  %v1402_v12 = vadd.f32 %v2406_v2, %v1346_v61  ;;  %v1307_v13 = vmul.f32 %v2420_v52, %v3499_v21  ;;  %v1380_v15 = vsub.f32 %v3404_v32, %v3465_v62 }
 0x215   : > { %v2424_v8 = vpop.eup %2423  ;;  %v1147_v19 = vadd.f32 %v1139_v44, %v1091_v53  ;;  %v1179_v4 = vadd.f32 %v2416_v14, %v1123_v50  ;;  %v1363_v20 = vmul.f32 %v2422_v56, %v3364_v7  ;;  %2439 = vpow2.f32 %v1334_v51 }
 0x216   : > { %v2426_v59 = vpop.eup %2425  ;;  %v1426_v11 = vadd.f32 %v1418_v49, %v1370_v58  ;;  %2441 = vrcp.f32 %v1402_v12  ;;  %v1419_v24 = vmul.f32 %v2424_v8, %v3503_v48  ;;  %v1390_v29 = vmul.f32 1.442695, %v1380_v15 }
 0x217   : > { %v2428_v30 = vpop.eup %2427  ;;  %v1203_v16 = vadd.f32 %v1195_v46, %v1147_v19  ;;  %v1235_v2 = vadd.f32 %v2418_v36, %v1179_v4  ;;  %v972_v31 = vmul.f32 %v2426_v59, %v3483_v42  ;;  %v909_v62 = vmax.f32 %v3468_v63, %v3361_v6  ;;  %v3520_v42 = vld [vmem:[#allocation2 + $0x62] sm:$0xff] }
 0x218   : > { %v2430_v33 = vpop.eup %2429  ;;  %v1012_v34 = vadd.f32 %v2428_v30, %v2426_v59  ;;  %v1028_v5 = vmul.f32 %v2428_v30, %v3340_v57  ;;  %2443 = vpow2.f32 %v1390_v29  ;;  %v910_v49 = vmax.f32 %v3471_v0, %v3354_v1  ;;  %v3523_v57 = vld [vmem:[#allocation3 + $0x40] sm:$0xff] }
 0x219   : > { %v2432_v47 = vpop.eup %2431  ;;  %v1259_v37 = vadd.f32 %v1251_v35, %v1203_v16  ;;  %v1291_v38 = vadd.f32 %v2420_v52, %v1235_v2  ;;  %v1084_v14 = vmul.f32 %v2430_v33, %v3486_v54  ;;  %v3518_v39 = vmax.f32 %v909_v62, %v3442_v17 }
 0x21a   : > { %v2434_v41 = vpop.eup %2433  ;;  %v1036_v63 = vadd.f32 %v1028_v5, %v972_v31  ;;  %v1068_v44 = vadd.f32 %v2430_v33, %v1012_v34  ;;  %v1140_v36 = vmul.f32 %v2432_v47, %v3499_v21  ;;  %v3526_v45 = vmax.f32 %v910_v49, %v3520_v42  ;;  %v3544_v33 = vld [vmem:[#allocation3 + $0x42] sm:$0xff] }
 0x21b   : > { %v2436_v0 = vpop.eup %2435  ;;  %v1315_v61 = vadd.f32 %v1307_v13, %v1259_v37  ;;  %v1347_v46 = vadd.f32 %v2422_v56, %v1291_v38  ;;  %v1196_v54 = vmul.f32 %v2434_v41, %v3364_v7  ;;  %v933_v52 = vsub.f32 %v3395_v26, %v3518_v39 }
 0x21c   : > { %v2438_v53 = vpop.eup %2437  ;;  %v1092_v50 = vadd.f32 %v1084_v14, %v1036_v63  ;;  %v1124_v35 = vadd.f32 %v2432_v47, %v1068_v44  ;;  %v1252_v51 = vmul.f32 %v2436_v0, %v3503_v48  ;;  %v989_v58 = vsub.f32 %v3344_v60, %v3518_v39 }
 0x21d   : > { %v1371_v12 = vadd.f32 %v1363_v20, %v1315_v61  ;;  %v1403_v15 = vadd.f32 %v2424_v8, %v1347_v46  ;;  %v1308_v19 = vmul.f32 %v2438_v53, %v3523_v57  ;;  %v944_v4 = vmul.f32 1.442695, %v933_v52  ;;  %v3541_v8 = vld [vmem:[#allocation13] ss:$0 sm:$0xff] }
 0x21e   : > { %v1148_v13 = vadd.f32 %v1140_v36, %v1092_v50  ;;  %v1180_v56 = vadd.f32 %v2434_v41, %v1124_v35  ;;  %v1000_v59 = vmul.f32 1.442695, %v989_v58  ;;  %v1045_v29 = vsub.f32 %v3413_v40, %v3518_v39 }
 0x21f   : > { %v2440_v26 = vpop.eup %2439  ;;  %v1427_v30 = vadd.f32 %v1419_v24, %v1371_v12  ;;  %2445 = vrcp.f32 %v1403_v15  ;;  %v1101_v16 = vsub.f32 %v3392_v25, %v3518_v39  ;;  %v1157_v60 = vsub.f32 %v3337_v55, %v3518_v39 }
 0x220   : > { %v2442_v20 = vpop.eup %2441  ;;  %v1204_v2 = vadd.f32 %v1196_v54, %v1148_v13  ;;  %v1236_v31 = vadd.f32 %v2436_v0, %v1180_v56  ;;  %v1364_v62 = vmul.f32 %v2440_v26, %v3357_v3  ;;  %2447 = vpow2.f32 %v944_v4 }
 0x221   : > { %v1442_v40 = vmul.f32 %v2442_v20, %v1426_v11  ;;  %2449 = vpow2.f32 %v1000_v59  ;;  %v1056_v24 = vmul.f32 1.442695, %v1045_v29  ;;  %v1112_v34 = vmul.f32 1.442695, %v1101_v16 }
 0x222   : > { %v2444_v5 = vpop.eup %2443  ;;  %v1260_v49 = vadd.f32 %v1252_v51, %v1204_v2  ;;  %v1292_v47 = vadd.f32 %v2438_v53, %v1236_v31  ;;  %v1168_v37 = vmul.f32 1.442695, %v1157_v60  ;;  %v1213_v38 = vsub.f32 %v3404_v32, %v3518_v39  ;;  %v3580_v31 = vld [vmem:[#allocation2 + $0x70] sm:$0xff] }
 0x223   : > { %v3549_v14 = vadd.f32 %v3541_v8, %v1442_v40  ;;  %v1420_v41 = vmul.f32 %v2444_v5, %v3544_v33  ;;  %2451 = vpow2.f32 %v1056_v24  ;;  %v1269_v63 = vsub.f32 %v3417_v43, %v3518_v39 }
 0x224   : > { %v1316_v11 = vadd.f32 %v1308_v19, %v1260_v49  ;;  %v1348_v44 = vadd.f32 %v2440_v26, %v1292_v47  ;;  %2453 = vpow2.f32 %v1112_v34  ;;  %v1224_v36 = vmul.f32 1.442695, %v1213_v38 }
 0x225   : > { %2121 = vmatprep.mubr.f32.mxu0 %v3549_v14  ;;  %2455 = vpow2.f32 %v1168_v37  ;;  %v1280_v0 = vmul.f32 1.442695, %v1269_v63  ;;  %v1325_v61 = vsub.f32 %v3361_v6, %v3518_v39  ;;  %v1381_v46 = vsub.f32 %v3442_v17, %v3518_v39 }
 0x226   : > { %v1372_v54 = vadd.f32 %v1364_v62, %v1316_v11  ;;  %v1404_v52 = vadd.f32 %v2444_v5, %v1348_v44  ;;  %2457 = vpow2.f32 %v1224_v36  ;;  %v934_v53 = vsub.f32 %v3392_v25, %v3526_v45 }
 0x227   : > { %2459 = vpow2.f32 %v1280_v0  ;;  %v1336_v50 = vmul.f32 1.442695, %v1325_v61  ;;  %v990_v35 = vsub.f32 %v3337_v55, %v3526_v45  ;;  %v832_v51 = vmax.f32 %v816_v28, %v3520_v42 }
 0x228   : > { %v1428_v58 = vadd.f32 %v1420_v41, %v1372_v54  ;;  %2461 = vrcp.f32 %v1404_v52  ;;  %v946_v12 = vmul.f32 1.442695, %v934_v53  ;;  %v1046_v39 = vsub.f32 %v3404_v32, %v3526_v45  ;;  %v3596_v52 = vld [vmem:[#allocation3 + $0x50] sm:$0xff] }
 0x229   : > { %v2446_v15 = vpop.eup %2445  ;;  %v1392_v19 = vmul.f32 1.442695, %v1381_v46  ;;  %v1002_v4 = vmul.f32 1.442695, %v990_v35  ;;  %v1102_v25 = vsub.f32 %v3417_v43, %v3526_v45  ;;  %v1158_v55 = vsub.f32 %v3361_v6, %v3526_v45 }
 0x22a   : > { %v2448_v13 = vpop.eup %2447  ;;  %v1443_v56 = vmul.f32 %v2446_v15, %v1427_v30  ;;  %2463 = vpow2.f32 %v1336_v50  ;;  %v1058_v59 = vmul.f32 1.442695, %v1046_v39  ;;  %v1214_v28 = vsub.f32 %v3442_v17, %v3526_v45  ;;  %v3598_v50 = vld [vmem:[#allocation2 + $0x71] sm:$0xff] }
 0x22b   : > { %v2450_v29 = vpop.eup %2449  ;;  %v973_v26 = vmul.f32 %v2448_v13, %v3499_v21  ;;  %2465 = vpow2.f32 %v946_v12  ;;  %v1114_v32 = vmul.f32 1.442695, %v1102_v25  ;;  %v1170_v16 = vmul.f32 1.442695, %v1158_v55 }
 0x22c   : > { %v3577_v60 = vadd.f32 %v3541_v8, %v1443_v56  ;;  %v1013_v20 = vadd.f32 %v2450_v29, %v2448_v13  ;;  %v1029_v2 = vmul.f32 %v2450_v29, %v3364_v7  ;;  %2467 = vpow2.f32 %v1002_v4  ;;  %v3608_v56 = vld [vmem:[#allocation2 + $0x72] sm:$0xff] }
 0x22d   : > { %v2452_v30 = vpop.eup %2451  ;;  %2469 = vpow2.f32 %v1058_v59  ;;  %v1270_v62 = vsub.f32 %v3434_v9, %v3526_v45  ;;  %v1326_v21 = vsub.f32 %v3354_v1, %v3526_v45  ;;  %v847_v40 = vmax.f32 %v3447_v27, %v3434_v9 }
 0x22e   : > { %v2454_v24 = vpop.eup %2453  ;;  %2122 = vmatmul.mubr.f32.vlgmr.msra.gmra.mrb[8].mxu0 %v3577_v60  ;;  %v1037_v34 = vadd.f32 %v1029_v2, %v973_v26  ;;  %v1069_v5 = vadd.f32 %v2452_v30, %v1013_v20  ;;  %v1085_v7 = vmul.f32 %v2452_v30, %v3503_v48  ;;  %2471 = vpow2.f32 %v1114_v32 }
 0x22f   : > { %v2456_v49 = vpop.eup %2455  ;;  %v1141_v47 = vmul.f32 %v2454_v24, %v3523_v57  ;;  %2473 = vpow2.f32 %v1392_v19  ;;  %v1226_v37 = vmul.f32 1.442695, %v1214_v28  ;;  %v848_v38 = vmax.f32 %v832_v51, %v3580_v31 }
 0x230   : > { %v2458_v41 = vpop.eup %2457  ;;  %v1093_v63 = vadd.f32 %v1085_v7, %v1037_v34  ;;  %v1125_v11 = vadd.f32 %v2454_v24, %v1069_v5  ;;  %2475 = vpow2.f32 %v1170_v16  ;;  %v1282_v27 = vmul.f32 1.442695, %v1270_v62  ;;  %v3616_v5 = vld [vmem:[#allocation3 + $0x52] sm:$0xff] }
 0x231   : > { %v2460_v44 = vpop.eup %2459  ;;  %v1382_v36 = vsub.f32 %v3520_v42, %v3526_v45  ;;  %v863_v0 = vmax.f32 %v847_v40, %v3354_v1  ;;  %v1197_v54 = vmul.f32 %v2456_v49, %v3357_v3  ;;  %v1338_v53 = vmul.f32 1.442695, %v1326_v21 }
 0x232   : > { %v2462_v48 = vpop.eup %2461  ;;  %v1149_v61 = vadd.f32 %v1141_v47, %v1093_v63  ;;  %v1181_v46 = vadd.f32 %v2456_v49, %v1125_v11  ;;  %2477 = vpow2.f32 %v1226_v37  ;;  %v864_v12 = vmax.f32 %v848_v38, %v3598_v50  ;;  %v3622_v37 = vld [vmem:[#allocation2 + $0x80] sm:$0xff] }
 0x233   : > { %v1444_v35 = vmul.f32 %v2462_v48, %v1428_v58  ;;  %v879_v51 = vmax.f32 %v863_v0, %v3520_v42  ;;  %v1253_v19 = vmul.f32 %v2458_v41, %v3544_v33  ;;  %2479 = vpow2.f32 %v1282_v27 }
 0x234   : > { %v2464_v39 = vpop.eup %2463  ;;  %v1205_v45 = vadd.f32 %v1197_v54, %v1149_v61  ;;  %v1237_v15 = vadd.f32 %v2458_v41, %v1181_v46  ;;  %v1309_v55 = vmul.f32 %v2460_v44, %v3596_v52  ;;  %v1394_v13 = vmul.f32 1.442695, %v1382_v36 }
 0x235   : > { %v2466_v4 = vpop.eup %2465  ;;  %v3604_v25 = vadd.f32 %v3541_v8, %v1444_v35  ;;  %v895_v58 = vmax.f32 %v879_v51, %v3580_v31  ;;  %v880_v32 = vmax.f32 %v864_v12, %v3608_v56  ;;  %v1365_v24 = vmul.f32 %v2464_v39, %v3389_v23 }
 0x236   : > { %v2468_v59 = vpop.eup %2467  ;;  %v1261_v28 = vadd.f32 %v1253_v19, %v1205_v45  ;;  %v1293_v29 = vadd.f32 %v2460_v44, %v1237_v15  ;;  %v974_v26 = vmul.f32 %v2466_v4, %v3523_v57  ;;  %2481 = vpow2.f32 %v1338_v53  ;;  %v3640_v15 = vld [vmem:[#allocation2 + $0x81] sm:$0xff] }
 0x237   : > { %v2470_v16 = vpop.eup %2469  ;;  %2124 = vmatprep.mubr.f32.mxu0 %v3604_v25  ;;  %v1014_v20 = vadd.f32 %v2468_v59, %v2466_v4  ;;  %v1030_v2 = vmul.f32 %v2468_v59, %v3357_v3  ;;  %v911_v30 = vmax.f32 %v895_v58, %v3386_v22  ;;  %2483 = vpow2.f32 %v1394_v13 }
 0x238   : > { %v2472_v62 = vpop.eup %2471  ;;  %v1317_v21 = vadd.f32 %v1309_v55, %v1261_v28  ;;  %v1349_v40 = vadd.f32 %v2464_v39, %v1293_v29  ;;  %v1086_v49 = vmul.f32 %v2470_v16, %v3544_v33  ;;  %v896_v41 = vmax.f32 %v880_v32, %v3622_v37  ;;  %v3646_v28 = vld [vmem:[#allocation3 + $0x60] sm:$0xff] }
 0x239   : > { %v2474_v34 = vpop.eup %2473  ;;  %v1038_v57 = vadd.f32 %v1030_v2, %v974_v26  ;;  %v1070_v7 = vadd.f32 %v2470_v16, %v1014_v20  ;;  %v3620_v47 = vmax.f32 %v911_v30, %v3608_v56  ;;  %v817_v63 = vmax.f32 %v3580_v31, %v3598_v50  ;;  %v3655_v2 = vld [vmem:[#allocation2 + $0x82] sm:$0xff] }
 0x23a   : > { %v2476_v3 = vpop.eup %2475  ;;  %v1405_v38 = vadd.f32 %v2474_v34, %v1349_v40  ;;  %v1142_v44 = vmul.f32 %v2472_v62, %v3596_v52  ;;  %v1373_v36 = vadd.f32 %v1365_v24, %v1317_v21  ;;  %v1421_v0 = vmul.f32 %v2474_v34, %v3616_v5 }
 0x23b   : > { %v1094_v11 = vadd.f32 %v1086_v49, %v1038_v57  ;;  %v1126_v27 = vadd.f32 %v2472_v62, %v1070_v7  ;;  %v935_v33 = vsub.f32 %v3417_v43, %v3620_v47  ;;  %v991_v48 = vsub.f32 %v3361_v6, %v3620_v47 }
 0x23c   : > { %2485 = vrcp.f32 %v1405_v38  ;;  %v2478_v61 = vpop.eup %2477  ;;  %v1198_v53 = vmul.f32 %v2476_v3, %v3389_v23  ;;  %v1047_v39 = vsub.f32 %v3442_v17, %v3620_v47  ;;  %v1103_v43 = vsub.f32 %v3434_v9, %v3620_v47 }
 0x23d   : > { %v1150_v46 = vadd.f32 %v1142_v44, %v1094_v11  ;;  %v1182_v54 = vadd.f32 %v2476_v3, %v1126_v27  ;;  %v948_v35 = vmul.f32 1.442695, %v935_v33  ;;  %v2480_v51 = vpop.eup %2479  ;;  %v1004_v12 = vmul.f32 1.442695, %v991_v48 }
 0x23e   : > { %v1159_v45 = vsub.f32 %v3354_v1, %v3620_v47  ;;  %v1215_v19 = vsub.f32 %v3520_v42, %v3620_v47  ;;  %v912_v4 = vmax.f32 %v896_v41, %v3640_v15  ;;  %v1060_v13 = vmul.f32 1.442695, %v1047_v39 }
 0x23f   : > { %v1238_v6 = vadd.f32 %v2478_v61, %v1182_v54  ;;  %2487 = vpow2.f32 %v948_v35  ;;  %v1206_v55 = vadd.f32 %v1198_v53, %v1150_v46  ;;  %v1116_v58 = vmul.f32 1.442695, %v1103_v43 }
 0x240   : > { %2489 = vpow2.f32 %v1004_v12  ;;  %v1254_v17 = vmul.f32 %v2478_v61, %v3616_v5  ;;  %v1172_v29 = vmul.f32 1.442695, %v1159_v45  ;;  %v3649_v1 = vmax.f32 %v817_v63, %v3608_v56  ;;  %v2482_v26 = vpop.eup %2481 }
 0x241   : > { %v1294_v59 = vadd.f32 %v2480_v51, %v1238_v6  ;;  %2491 = vpow2.f32 %v1060_v13  ;;  %v1228_v32 = vmul.f32 1.442695, %v1215_v19  ;;  %v1271_v16 = vsub.f32 %v3580_v31, %v3620_v47  ;;  %v2484_v40 = vpop.eup %2483 }
 0x242   : > { %v1327_v20 = vsub.f32 %v3386_v22, %v3620_v47  ;;  %v1429_v30 = vadd.f32 %v1421_v0, %v1373_v36  ;;  %2493 = vpow2.f32 %v1116_v58  ;;  %v3658_v21 = vmax.f32 %v912_v4, %v3655_v2 }
 0x243   : > { %v1350_v62 = vadd.f32 %v2482_v26, %v1294_v59  ;;  %v1262_v24 = vadd.f32 %v1254_v17, %v1206_v55  ;;  %v1310_v34 = vmul.f32 %v2480_v51, %v3646_v28  ;;  %2495 = vpow2.f32 %v1172_v29 }
 0x244   : > { %v1284_v57 = vmul.f32 1.442695, %v1271_v16  ;;  %v1340_v49 = vmul.f32 1.442695, %v1327_v20  ;;  %v1383_v3 = vsub.f32 %v3608_v56, %v3620_v47  ;;  %v936_v22 = vsub.f32 %v3434_v9, %v3658_v21 }
 0x245   : > { %v1406_v7 = vadd.f32 %v2484_v40, %v1350_v62  ;;  %2497 = vpow2.f32 %v1228_v32  ;;  %v992_v41 = vsub.f32 %v3436_v10, %v3658_v21  ;;  %v1048_v63 = vsub.f32 %v3520_v42, %v3658_v21  ;;  %v3675_v10 = vld [vmem:[#allocation3 + $0x62] sm:$0xff] }
 0x246   : > { %v2486_v38 = vpop.eup %2485  ;;  %v1104_v11 = vsub.f32 %v3580_v31, %v3658_v21  ;;  %v1366_v44 = vmul.f32 %v2482_v26, %v3382_v18  ;;  %v950_v33 = vmul.f32 1.442695, %v936_v22  ;;  %v1318_v47 = vadd.f32 %v1310_v34, %v1262_v24 }
 0x247   : > { %v1445_v27 = vmul.f32 %v2486_v38, %v1429_v30  ;;  %2499 = vrcp.f32 %v1406_v7  ;;  %v1006_v36 = vmul.f32 1.442695, %v992_v41  ;;  %v1062_v9 = vmul.f32 1.442695, %v1048_v63  ;;  %v1024_v41 = vld [vmem:[#allocation3 + $0x61] sm:$0xff] }
 0x248   : > { %2501 = vpow2.f32 %v1284_v57  ;;  %v1118_v42 = vmul.f32 1.442695, %v1104_v11  ;;  %v1160_v61 = vsub.f32 %v3598_v50, %v3658_v21  ;;  %v1396_v53 = vmul.f32 1.442695, %v1383_v3  ;;  %v3698_v11 = vld [vmem:[#allocation2 + $0x91] sm:$0xff] }
 0x249   : > { %v2488_v0 = vpop.eup %2487  ;;  %v3673_v48 = vadd.f32 %v3541_v8, %v1445_v27  ;;  %2503 = vpow2.f32 %v1340_v49  ;;  %v1216_v35 = vsub.f32 %v3608_v56, %v3658_v21  ;;  %v1374_v45 = vadd.f32 %v1366_v44, %v1318_v47 }
 0x24a   : > { %v2490_v46 = vpop.eup %2489  ;;  %v975_v54 = vmul.f32 %v2488_v0, %v3596_v52  ;;  %2505 = vpow2.f32 %v950_v33  ;;  %v1174_v39 = vmul.f32 1.442695, %v1160_v61  ;;  %v1422_v6 = vmul.f32 %v2484_v40, %v3675_v10  ;;  %v3704_v33 = vld [vmem:[#allocation2] sm:$0xff] }
 0x24b   : > { %2125 = vmatmul.mubr.f32.gmra.mrb[10].mxu0 %v3673_v48  ;;  %v1015_v51 = vadd.f32 %v2490_v46, %v2488_v0  ;;  %v1031_v12 = vmul.f32 %v2490_v46, %v3389_v23  ;;  %2507 = vpow2.f32 %v1006_v36  ;;  %v2492_v43 = vpop.eup %2491  ;;  %v1272_v52 = vsub.f32 %v3622_v37, %v3658_v21  ;;  %v3711_v46 = vld [vmem:[#allocation3 + $0x70] sm:$0xff] }
 0x24c   : > { %2509 = vpow2.f32 %v1062_v9  ;;  %v2494_v19 = vpop.eup %2493  ;;  %v1087_v13 = vmul.f32 %v2492_v43, %v3616_v5  ;;  %v1230_v17 = vmul.f32 1.442695, %v1216_v35  ;;  %v1328_v23 = vsub.f32 %v3640_v15, %v3658_v21 }
 0x24d   : > { %v1039_v4 = vadd.f32 %v1031_v12, %v975_v54  ;;  %v1071_v55 = vadd.f32 %v2492_v43, %v1015_v51  ;;  %2511 = vpow2.f32 %v1118_v42  ;;  %v2496_v58 = vpop.eup %2495  ;;  %v849_v59 = vmax.f32 %v3649_v1, %v3622_v37  ;;  %v3708_v42 = vld [vmem:[#allocation2 + $0x92] sm:$0xff] }
 0x24e   : > { %2513 = vpow2.f32 %v1396_v53  ;;  %v1143_v32 = vmul.f32 %v2494_v19, %v3646_v28  ;;  %v1430_v20 = vadd.f32 %v1422_v6, %v1374_v45  ;;  %v1286_v30 = vmul.f32 1.442695, %v1272_v52 }
 0x24f   : > { %v1095_v29 = vadd.f32 %v1087_v13, %v1039_v4  ;;  %v1127_v26 = vadd.f32 %v2494_v19, %v1071_v55  ;;  %2515 = vpow2.f32 %v1174_v39  ;;  %v2498_v16 = vpop.eup %2497  ;;  %v865_v5 = vmax.f32 %v849_v59, %v3640_v15  ;;  %v3719_v55 = vld [vmem:[#allocation3 + $0x71] sm:$0xff] }
 0x250   : > { %v1199_v34 = vmul.f32 %v2496_v58, %v3382_v18  ;;  %v1384_v57 = vsub.f32 %v3655_v2, %v3658_v21  ;;  %2517 = vpow2.f32 %v1230_v17  ;;  %v1342_v63 = vmul.f32 1.442695, %v1328_v23 }
 0x251   : > { %v2500_v62 = vpop.eup %2499  ;;  %v1151_v40 = vadd.f32 %v1143_v32, %v1095_v29  ;;  %v1183_v24 = vadd.f32 %v2496_v58, %v1127_v26  ;;  %v881_v49 = vmax.f32 %v865_v5, %v3655_v2  ;;  %v1255_v18 = vmul.f32 %v2498_v16, %v3675_v10 }
 0x252   : > { %v2502_v7 = vpop.eup %2501  ;;  %v1446_v1 = vmul.f32 %v2500_v62, %v1430_v20  ;;  %2519 = vpow2.f32 %v1286_v30  ;;  %v1398_v0 = vmul.f32 1.442695, %v1384_v57 }
 0x253   : > { %v2504_v3 = vpop.eup %2503  ;;  %v1207_v22 = vadd.f32 %v1199_v34, %v1151_v40  ;;  %v1239_v38 = vadd.f32 %v2498_v16, %v1183_v24  ;;  %v897_v21 = vmax.f32 %v881_v49, %v3704_v33  ;;  %2521 = vpow2.f32 %v1342_v63  ;;  %v1415_v24 = vld [vmem:[#allocation3 + $0x72] sm:$0xff] }
 0x254   : > { %v2506_v27 = vpop.eup %2505  ;;  %v3701_v44 = vadd.f32 %v3541_v8, %v1446_v1  ;;  %v1311_v4 = vmul.f32 %v2502_v7, %v3711_v46  ;;  %2523 = vpow2.f32 %v1398_v0  ;;  %v1367_v5 = vmul.f32 %v2504_v3, %v3719_v55 }
 0x255   : > { %v2508_v47 = vpop.eup %2507  ;;  %v1295_v36 = vadd.f32 %v2502_v7, %v1239_v38  ;;  %v976_v9 = vmul.f32 %v2506_v27, %v3646_v28  ;;  %v913_v35 = vmax.f32 %v897_v21, %v3698_v11  ;;  %v1263_v12 = vadd.f32 %v1255_v18, %v1207_v22  ;;  %v1304_v18 = vld [vmem:[#allocation3 + $0x80] sm:$0xff] }
 0x256   : > { %v2510_v61 = vpop.eup %2509  ;;  %2127 = vmatprep.mubr.f32.mxu0 %v3701_v44  ;;  %v1016_v54 = vadd.f32 %v2508_v47, %v2506_v27  ;;  %v1032_v53 = vmul.f32 %v2508_v47, %v1024_v41 }
 0x257   : > { %v2512_v51 = vpop.eup %2511  ;;  %v1351_v39 = vadd.f32 %v2504_v3, %v1295_v36  ;;  %v1088_v6 = vmul.f32 %v2510_v61, %v3675_v10  ;;  %v3716_v52 = vmax.f32 %v913_v35, %v3708_v42  ;;  %v1319_v29 = vadd.f32 %v1311_v4, %v1263_v12  ;;  %v1360_v12 = vld [vmem:[#allocation3 + $0x81] sm:$0xff] }
 0x258   : > { %v2514_v43 = vpop.eup %2513  ;;  %v1040_v45 = vadd.f32 %v1032_v53, %v976_v9  ;;  %v1072_v28 = vadd.f32 %v2510_v61, %v1016_v54  ;;  %v1144_v23 = vmul.f32 %v2512_v51, %v3711_v46 }
 0x259   : > { %v2516_v19 = vpop.eup %2515  ;;  %v1407_v13 = vadd.f32 %v2514_v43, %v1351_v39  ;;  %v937_v59 = vsub.f32 %v3580_v31, %v3716_v52  ;;  %v993_v10 = vsub.f32 %v3598_v50, %v3716_v52  ;;  %v1049_v40 = vsub.f32 %v3608_v56, %v3716_v52 }
 0x25a   : > { %v1096_v58 = vadd.f32 %v1088_v6, %v1040_v45  ;;  %v1128_v17 = vadd.f32 %v2512_v51, %v1072_v28  ;;  %v1200_v16 = vmul.f32 %v2516_v19, %v3719_v55  ;;  %v2518_v30 = vpop.eup %2517  ;;  %v1105_v31 = vsub.f32 %v3622_v37, %v3716_v52 }
 0x25b   : > { %2525 = vrcp.f32 %v1407_v13  ;;  %v952_v20 = vmul.f32 1.442695, %v937_v59  ;;  %v1008_v62 = vmul.f32 1.442695, %v993_v10  ;;  %v1161_v50 = vsub.f32 %v3640_v15, %v3716_v52  ;;  %v1416_v13 = vld [vmem:[#allocation3 + $0x82] sm:$0xff] }
 0x25c   : > { %v1152_v26 = vadd.f32 %v1144_v23, %v1096_v58  ;;  %v1184_v32 = vadd.f32 %v2516_v19, %v1128_v17  ;;  %v2520_v7 = vpop.eup %2519  ;;  %v1064_v1 = vmul.f32 1.442695, %v1049_v40  ;;  %v1120_v49 = vmul.f32 1.442695, %v1105_v31 }
 0x25d   : > { %2527 = vpow2.f32 %v952_v20  ;;  %v1217_v3 = vsub.f32 %v3655_v2, %v3716_v52  ;;  %v1375_v22 = vadd.f32 %v1367_v5, %v1319_v29  ;;  %v1176_v56 = vmul.f32 1.442695, %v1161_v50  ;;  %v2522_v41 = vpop.eup %2521 }
 0x25e   : > { %v1208_v34 = vadd.f32 %v1200_v16, %v1152_v26  ;;  %v1240_v57 = vadd.f32 %v2518_v30, %v1184_v32  ;;  %2529 = vpow2.f32 %v1008_v62  ;;  %v1256_v63 = vmul.f32 %v2518_v30, %v1415_v24  ;;  %v2524_v15 = vpop.eup %2523 }
 0x25f   : > { %2531 = vpow2.f32 %v1064_v1  ;;  %v1273_v37 = vsub.f32 %v3704_v33, %v3716_v52  ;;  %v1423_v27 = vmul.f32 %v2514_v43, %v1415_v24  ;;  %v1232_v36 = vmul.f32 1.442695, %v1217_v3 }
 0x260   : > { %v1296_v38 = vadd.f32 %v2520_v7, %v1240_v57  ;;  %2533 = vpow2.f32 %v1120_v49  ;;  %v1264_v47 = vadd.f32 %v1256_v63, %v1208_v34  ;;  %v1329_v9 = vsub.f32 %v3698_v11, %v3716_v52 }
 0x261   : > { %v1431_v2 = vadd.f32 %v1423_v27, %v1375_v22  ;;  %2535 = vpow2.f32 %v1176_v56  ;;  %v1312_v54 = vmul.f32 %v2520_v7, %v1304_v18  ;;  %v1288_v53 = vmul.f32 1.442695, %v1273_v37  ;;  %v1361_v37 = vld [vmem:[#allocation3 + $0x91] sm:$0xff] }
 0x262   : > { %v1352_v21 = vadd.f32 %v2522_v41, %v1296_v38  ;;  %v1385_v35 = vsub.f32 %v3708_v42, %v3716_v52  ;;  %v1344_v43 = vmul.f32 1.442695, %v1329_v9  ;;  %v1368_v6 = vmul.f32 %v2522_v41, %v1360_v12 }
 0x263   : > { %v1320_v39 = vadd.f32 %v1312_v54, %v1264_v47  ;;  %v1424_v26 = vmul.f32 %v2524_v15, %v1416_v13 }
 0x264   : > { %v1408_v0 = vadd.f32 %v2524_v15, %v1352_v21  ;;  %v1400_v4 = vmul.f32 1.442695, %v1385_v35  ;;  %v1417_v21 = vld [vmem:[#allocation3 + $0x92] sm:$0xff] }
 0x265   : > { %v2526_v61 = vpop.eup %2525  ;;  %v1376_v17 = vadd.f32 %v1368_v6, %v1320_v39 }
 0x266   : > { %v1447_v51 = vmul.f32 %v2526_v61, %v1431_v2  ;;  %2537 = vrcp.f32 %v1408_v0 }
 0x267   : > { %2539 = vpow2.f32 %v1232_v36  ;;  %v2528_v45 = vpop.eup %2527  ;;  %v1432_v30 = vadd.f32 %v1424_v26, %v1376_v17 }
 0x268   : > { %v3743_v28 = vadd.f32 %v3541_v8, %v1447_v51  ;;  %v2530_v11 = vpop.eup %2529  ;;  %v977_v19 = vmul.f32 %v2528_v45, %v3711_v46  ;;  %2541 = vpow2.f32 %v1288_v53 }
 0x269   : > { %v1017_v42 = vadd.f32 %v2530_v11, %v2528_v45  ;;  %v1033_v52 = vmul.f32 %v2530_v11, %v3719_v55  ;;  %v2532_v58 = vpop.eup %2531  ;;  %2543 = vpow2.f32 %v1344_v43 }
 0x26a   : > { %2128 = vmatmul.mubr.f32.gmra.mrb[12].mxu0 %v3743_v28  ;;  %v2534_v23 = vpop.eup %2533  ;;  %v1089_v10 = vmul.f32 %v2532_v58, %v1415_v24  ;;  %2545 = vpow2.f32 %v1400_v4 }
 0x26b   : > { %v1041_v59 = vadd.f32 %v1033_v52, %v977_v19  ;;  %v1073_v29 = vadd.f32 %v2532_v58, %v1017_v42  ;;  %v2536_v32 = vpop.eup %2535  ;;  %v1145_v20 = vmul.f32 %v2534_v23, %v1304_v18 }
 0x26c   : > { %v1201_v55 = vmul.f32 %v2536_v32, %v1360_v12 }
 0x26d   : > { %v1097_v16 = vadd.f32 %v1089_v10, %v1041_v59  ;;  %v1129_v46 = vadd.f32 %v2534_v23, %v1073_v29  ;;  %v1968_v10 = vld [vmem:[#allocation15] ss:$0 sm:$0xff] }
 0x26f   : > { %v1153_v62 = vadd.f32 %v1145_v20, %v1097_v16  ;;  %v1185_v40 = vadd.f32 %v2536_v32, %v1129_v46  ;;  %v1969_v16 = vld [vmem:[#allocation16] ss:$0 sm:$0xff] }
 0x270   : > { %v2538_v5 = vpop.eup %2537 }
 0x271   : > { %v2540_v31 = vpop.eup %2539  ;;  %v1448_v34 = vmul.f32 %v2538_v5, %v1432_v30  ;;  %v1209_v1 = vadd.f32 %v1201_v55, %v1153_v62 }
 0x272   : > { %v1241_v57 = vadd.f32 %v2540_v31, %v1185_v40  ;;  %v2542_v50 = vpop.eup %2541  ;;  %v1257_v3 = vmul.f32 %v2540_v31, %v1416_v13 }
 0x273   : > { %v1463_v7 = vadd.f32 %v3541_v8, %v1448_v34  ;;  %v2544_v24 = vpop.eup %2543  ;;  %v1313_v63 = vmul.f32 %v3704_v33, %v2542_v50 }
 0x274   : > { %v1297_v49 = vadd.f32 %v2542_v50, %v1241_v57  ;;  %v2546_v38 = vpop.eup %2545  ;;  %v1265_v56 = vadd.f32 %v1257_v3, %v1209_v1  ;;  %v1369_v18 = vmul.f32 %v2544_v24, %v1361_v37 }
 0x275   : > { %2130 = vmatprep.mubr.f32.mxu0 %v1463_v7  ;;  %v1425_v47 = vmul.f32 %v2546_v38, %v1417_v21 }
 0x276   : > { %v1353_v22 = vadd.f32 %v2544_v24, %v1297_v49  ;;  %v1321_v27 = vadd.f32 %v1313_v63, %v1265_v56 }
 0x278   : > { %v1409_v41 = vadd.f32 %v2546_v38, %v1353_v22  ;;  %v1377_v15 = vadd.f32 %v1369_v18, %v1321_v27 }
 0x27a   : > { %2547 = vrcp.f32 %v1409_v41  ;;  %v1433_v36 = vadd.f32 %v1425_v47, %v1377_v15 }
 0x284   : > { %v2548_v9 = vpop.eup %2547 }
 0x285   : > { %v1449_v2 = vmul.f32 %v2548_v9, %v1433_v36 }
 0x287   : > { %v1464_v0 = vadd.f32 %v3541_v8, %v1449_v2 }
 0x289   : > { %2131 = vmatmul.mubr.f32.gmra.mrb[14].mxu0 %v1464_v0 }
 0x301   : > { %v2123_v61 = vpop.f32.mrb[8].mxu0 }
 0x302   : > { %v1587_v54 = vsub.f32 %v3577_v60, %v2123_v61  ;;  %v1547_v53 = vpop.f32.mrb[9].mxu0 }
 0x303   : > { %v1586_v35 = vsub.f32 %v3549_v14, %v1547_v53 }
 0x304   : > { %v1595_v51 = vmul.f32 %v1587_v54, %v1587_v54 }
 0x305   : > { %v1594_v33 = vmul.f32 %v1586_v35, %v1586_v35 }
 0x307   : > { %2165 = vmatprep.mubr.f32.mxu1 %v1594_v33 }
 0x308   : > { %2166 = vmatmul.mubr.f32.vlgmr.msra.gmra.mrb[8].mxu1 %v1595_v51 }
 0x31e   : > { %v2126_v12 = vpop.f32.mrb[10].mxu0 }
 0x31f   : > { %v1589_v39 = vsub.f32 %v3673_v48, %v2126_v12  ;;  %v1557_v43 = vpop.f32.mrb[11].mxu0 }
 0x320   : > { %v1588_v45 = vsub.f32 %v3604_v25, %v1557_v43 }
 0x321   : > { %v1597_v6 = vmul.f32 %v1589_v39, %v1589_v39 }
 0x322   : > { %v1596_v11 = vmul.f32 %v1588_v45, %v1588_v45 }
 0x324   : > { %2168 = vmatprep.mubr.f32.mxu1 %v1596_v11 }
 0x325   : > { %2169 = vmatmul.mubr.f32.gmra.mrb[10].mxu1 %v1597_v6 }
 0x33d   : > { %v2129_v8 = vpop.f32.mrb[12].mxu0 }
 0x33e   : > { %v1591_v60 = vsub.f32 %v3743_v28, %v2129_v8  ;;  %v1567_v19 = vpop.f32.mrb[13].mxu0 }
 0x33f   : > { %v1590_v14 = vsub.f32 %v3701_v44, %v1567_v19 }
 0x340   : > { %v1599_v13 = vmul.f32 %v1591_v60, %v1591_v60 }
 0x341   : > { %v1598_v4 = vmul.f32 %v1590_v14, %v1590_v14 }
 0x343   : > { %2171 = vmatprep.mubr.f32.mxu1 %v1598_v4 }
 0x344   : > { %2172 = vmatmul.mubr.f32.gmra.mrb[12].mxu1 %v1599_v13 }
 0x35c   : > { %v2132_v42 = vpop.f32.mrb[14].mxu0 }
 0x35d   : > { %v3757_v52 = vsub.f32 %v1464_v0, %v2132_v42  ;;  %v1577_v48 = vpop.f32.mrb[15].mxu0 }
 0x35e   : > { %v3759_v58 = vsub.f32 %v1463_v7, %v1577_v48 }
 0x35f   : > { %v1601_v17 = vmul.f32 %v3757_v52, %v3757_v52 }
 0x360   : > { %v1600_v25 = vmul.f32 %v3759_v58, %v3759_v58 }
 0x362   : > { %2174 = vmatprep.mubr.f32.mxu1 %v1600_v25 }
 0x363   : > { %2175 = vmatmul.mubr.f32.gmra.mrb[14].mxu1 %v1601_v17 }
 0x3db   : > { %v2167_v28 = vpop.f32.mrb[8].mxu1 }
 0x3dc   : > { %v1674_v44 = vadd.f32 1e-05, %v2167_v28  ;;  %v1668_v23 = vpop.f32.mrb[9].mxu1 }
 0x3dd   : > { %v1669_v59 = vadd.f32 1e-05, %v1668_v23 }
 0x3de   : > { %2549 = vrsqrt.f32 %v1674_v44 }
 0x3df   : > { %2551 = vrsqrt.f32 %v1669_v59 }
 0x3e8   : > { %v2550_v29 = vpop.eup %2549 }
 0x3e9   : > { %v2552_v26 = vpop.eup %2551  ;;  %v1716_v32 = vmul.f32 %v2550_v29, %v1587_v54 }
 0x3ea   : > { %v1715_v46 = vmul.f32 %v2552_v26, %v1586_v35 }
 0x3eb   : > { %v1731_v20 = vmul.f32 %v1968_v10, %v1716_v32 }
 0x3ec   : > { %v1730_v30 = vmul.f32 %v1968_v10, %v1715_v46 }
 0x3ed   : > { %v1746_v5 = vadd.f32 %v1969_v16, %v1731_v20 }
 0x3ee   : > { %v1745_v62 = vadd.f32 %v1969_v16, %v1730_v30 }
 0x3ef   : > { %1754 = vst [vmem:[%s3767_s16 + $0x8] sm:$0xff] %v1746_v5 }
 0x3f0   : > { %1753 = vst [vmem:[%s3767_s16] sm:$0xff] %v1745_v62 }
 0x3f8   : > { %v2170_v40 = vpop.f32.mrb[10].mxu1 }
 0x3f9   : > { %v1684_v31 = vadd.f32 1e-05, %v2170_v40  ;;  %v1678_v34 = vpop.f32.mrb[11].mxu1 }
 0x3fa   : > { %v1679_v55 = vadd.f32 1e-05, %v1678_v34 }
 0x3fb   : > { %2553 = vrsqrt.f32 %v1684_v31 }
 0x3fc   : > { %2555 = vrsqrt.f32 %v1679_v55 }
 0x405   : > { %v2554_v57 = vpop.eup %2553 }
 0x406   : > { %v2556_v50 = vpop.eup %2555  ;;  %v1718_v7 = vmul.f32 %v2554_v57, %v1589_v39 }
 0x407   : > { %v1717_v1 = vmul.f32 %v2556_v50, %v1588_v45 }
 0x408   : > { %v1733_v49 = vmul.f32 %v1968_v10, %v1718_v7 }
 0x409   : > { %v1732_v24 = vmul.f32 %v1968_v10, %v1717_v1 }
 0x40a   : > { %v1748_v3 = vadd.f32 %v1969_v16, %v1733_v49 }
 0x40b   : > { %v1747_v22 = vadd.f32 %v1969_v16, %v1732_v24 }
 0x40c   : > { %1756 = vst [vmem:[%s3767_s16 + $0x18] sm:$0xff] %v1748_v3 }
 0x40d   : > { %1755 = vst [vmem:[%s3767_s16 + $0x10] sm:$0xff] %v1747_v22 }
 0x417   : > { %v2173_v38 = vpop.f32.mrb[12].mxu1 }
 0x418   : > { %v1694_v56 = vadd.f32 1e-05, %v2173_v38  ;;  %v1688_v41 = vpop.f32.mrb[13].mxu1 }
 0x419   : > { %v1689_v63 = vadd.f32 1e-05, %v1688_v41 }
 0x41a   : > { %2557 = vrsqrt.f32 %v1694_v56 }
 0x41b   : > { %2559 = vrsqrt.f32 %v1689_v63 }
 0x424   : > { %v2558_v37 = vpop.eup %2557 }
 0x425   : > { %v2560_v27 = vpop.eup %2559  ;;  %v1720_v18 = vmul.f32 %v2558_v37, %v1591_v60 }
 0x426   : > { %v1719_v21 = vmul.f32 %v2560_v27, %v1590_v14 }
 0x427   : > { %v1735_v15 = vmul.f32 %v1968_v10, %v1720_v18 }
 0x428   : > { %v1734_v47 = vmul.f32 %v1968_v10, %v1719_v21 }
 0x429   : > { %v1750_v36 = vadd.f32 %v1969_v16, %v1735_v15 }
 0x42a   : > { %v1749_v9 = vadd.f32 %v1969_v16, %v1734_v47 }
 0x42b   : > { %1758 = vst [vmem:[%s3767_s16 + $0x28] sm:$0xff] %v1750_v36 }
 0x42c   : > { %1757 = vst [vmem:[%s3767_s16 + $0x20] sm:$0xff] %v1749_v9 }
 0x436   : > { %v2176_v2 = vpop.f32.mrb[14].mxu1 }
 0x437   : > { %v1704_v0 = vadd.f32 1e-05, %v2176_v2  ;;  %v1698_v61 = vpop.f32.mrb[15].mxu1 }
 0x438   : > { %v1699_v54 = vadd.f32 1e-05, %v1698_v61 }
 0x439   : > { %2561 = vrsqrt.f32 %v1704_v0 }
 0x43a   : > { %2563 = vrsqrt.f32 %v1699_v54 }
 0x443   : > { %v2562_v53 = vpop.eup %2561 }
 0x444   : > { %v2564_v35 = vpop.eup %2563  ;;  %v1722_v33 = vmul.f32 %v2562_v53, %v3757_v52 }
 0x445   : > { %v1721_v51 = vmul.f32 %v2564_v35, %v3759_v58 }
 0x446   : > { %v1737_v12 = vmul.f32 %v1968_v10, %v1722_v33 }
 0x447   : > { %v1736_v39 = vmul.f32 %v1968_v10, %v1721_v51 }
 0x448   : > { %v1752_v43 = vadd.f32 %v1969_v16, %v1737_v12 }
 0x449   : > { %v1751_v45 = vadd.f32 %v1969_v16, %v1736_v39 }
 0x44a   : > { %1760 = vst [vmem:[%s3767_s16 + $0x38] sm:$0xff] %v1752_v43 }
 0x44b   : > { %1759 = vst [vmem:[%s3767_s16 + $0x30] sm:$0xff] %v1751_v45 }
 0x44c   : > { %2833 = shalt.err (!%p2830_p10)
}
 0x44d   : > { %s2834_s22 = scalar_lea.hbm %s3782_s23, 1024  ;;  %s2838_s20 = scalar_lea.hbm %s3870_s26, 2048 }
 0x44e   : > { %p2835_p11 = scmp.ne.s32.totalorder %s3782_s23, %s2834_s22  ;;  %p2839_p7 = scmp.lt.u32.totalorder %s3782_s23, %s3870_s26 }
 0x44f   : > { %p2840_p6 = scmp.lt.u32.totalorder %s2838_s20, %s2834_s22  ;;  %p2842_p12 = scmp.lt.u32.totalorder %s2834_s22, %s3782_s23 }
 0x450   : > { %p2836_p0 = pnand %p2835_p11, %p3871_p13 }
 0x451   : > { %p2841_p9 = por %p2840_p6, %p2839_p7 }
 0x452   : > { %p2837_p5 = pneg %p2836_p0 }
 0x453   : > { %p2843_p1 = por %p2842_p12, %p2841_p9 }
 0x455   : > { %p2844_p3 = pnand %p2843_p1, %p2837_p5 }
 0x457   : > { %2847 = shalt.err (!%p2844_p3)
}
 0x458   : > { %s2917_s17 = smov 128   ;;  %s2918_s15 = smov 8  }
 0x459   : > { %2291 = dma.vmem_to_hbm [thread:$0]  (%p3871_p13), %s3784_s25, 1024, %s3782_s23, %s1762_s28, %s2917_s17, %s2917_s17, %s2918_s15  }
 0x45a PF: > { %s1790_s13 = sand.u32 1, %s2890_s30   ;;  %p3872_p2 = scmp.ne.s32.totalorder %s3858_s21, 0 }
 0x45b   : > { %p3873_p8 = scmp.ge.s32.totalorder %s2902_s12, 2  ;;  %s1791_s19 = scalar_lea.sflag [#allocation6], %s1790_s13 }
 0x45d   : > { %p2323_p4 = pnand %p3873_p8, %p3872_p2 }
 0x45f   : > { %2885 = dma.done.wait (!%p2323_p4), %s1791_s19, 1024  }
 0x460   : > { %2887 = vsyncadd (!%p2323_p4), %s1791_s19, 4294966272  ;;  %p26_p10 = scmp.ge.s32.totalorder %s3192_s27, 4   ;;  %s3874_s30 = smov %s2894_s10 }
 0x461   : > { %s3875_s10 = smov %s2898_s11  ;;  %s3876_s11 = smov %s3203_s14 }
 0x462   : > { %s3877_s12 = smov %s3192_s27  ;;  %28 = sbr.rel (!%p26_p10) target bundleno = 12 (0xc), region = 149 }
 0x469   :  { %1796 = vsyncpa [#allocation5], 1 }
 0x46a   :  { %1798 = vsyncpa [#allocation5 + $0x1], 1 }
 0x46b   :  { %1799 = vsyncpa [#allocation8], 1 }
 0x46c   :  { %1800 = vsyncpa [#allocation11], 1 }
 0x46d   :  { %1801 = vsyncpa [#allocation14], 1 }
 0x46e   :  { %1802 = vsyncpa [#allocation17], 1 }
 0x46f   :  { %1803 = vsyncpa [#allocation6], 1 }
 0x470   :  { %1805 = vsyncpa [#allocation6 + $0x1], 1 }

</bundles_post_ra>
